<compile_context>
chip_gen: v5e
topology: v5e:2x2
jax: 0.10.0
libtpu: 0.0.40
codegen_flags: <defaults>
</compile_context>

<pallas_src>
import functools

import jax
import jax.numpy as jnp
from jax.experimental import pallas as pl
from jax.experimental.pallas import tpu as pltpu


def _round_up(x, m):
    return (x + m - 1) // m * m


def _num_tensorcores():
    """Best-effort TensorCores-per-chip (2 on v7x, 1 on v5e/v6e). Conservative fallback = 1."""
    try:
        dev = jax.devices()[0]
        n = getattr(dev, "num_cores", None)
        if n:
            return int(n)
        kind = str(getattr(dev, "device_kind", "")).lower()
        if "v7" in kind or "7x" in kind:
            return 2
    except Exception:
        pass
    return 1


def _pad_gate_cols(m, H, Hp):
    """Zero-pad each of the 3 gate blocks along the last axis from H to Hp."""
    if H == Hp:
        return m
    parts = jnp.split(m, 3, axis=-1)
    pad = [(0, 0)] * (m.ndim - 1) + [(0, Hp - H)]
    return jnp.concatenate([jnp.pad(p, pad) for p in parts], axis=-1)


def _gru_kernel(gi_ref, whh_ref, bhn_ref, h0_ref, out_ref, h_scr):
    """One grid step = one (batch block, time chunk). Time-major blocks.

    gi_ref : (TC, BB, 3*Hp)  precomputed input projection with fused biases
    whh_ref: (Hp, 3*Hp)      transposed hidden weights (gate-padded)
    bhn_ref: (1, Hp)         hidden bias of the 'n' gate (stays inside r*(.))
    h0_ref : (BB, Hp)        initial hidden state (f32)
    out_ref: (TC, BB, Hp)    per-step hidden outputs (time-major)
    h_scr  : (BB, Hp) f32    hidden state carried across time chunks
    """
    tc = pl.program_id(1)

    @pl.when(tc == 0)
    def _():
        h_scr[...] = h0_ref[...].astype(jnp.float32)

    BB, Hp = h_scr.shape
    TC = out_ref.shape[0]

    # Loop-invariant hoists: single VMEM->vreg read of W, single bhn broadcast.
    W = whh_ref[...]                                                  # (Hp, 3Hp)
    bhn = jnp.broadcast_to(bhn_ref[...].astype(jnp.float32), (BB, Hp))

    h = h_scr[...]                                                    # (BB, Hp) f32
    for j in range(TC):                                               # static unroll
        gi = gi_ref[j].astype(jnp.float32)                            # (BB, 3Hp) full-tile load
        gh = jnp.dot(h.astype(W.dtype), W,
                     preferred_element_type=jnp.float32)              # (BB, 3Hp)
        # sigmoid(x) == 0.5*tanh(0.5*x)+0.5  -> one EUP op per gate
        r = 0.5 * jnp.tanh(0.5 * (gi[:, 0:Hp] + gh[:, 0:Hp])) + 0.5
        z = 0.5 * jnp.tanh(0.5 * (gi[:, Hp:2 * Hp] + gh[:, Hp:2 * Hp])) + 0.5
        n = jnp.tanh(gi[:, 2 * Hp:3 * Hp] + r * (gh[:, 2 * Hp:3 * Hp] + bhn))
        h = n + z * (h - n)
        out_ref[j] = h.astype(out_ref.dtype)                          # full-tile store
    h_scr[...] = h


@functools.partial(jax.jit, static_argnames=("t_chunk",))
def gru_forward(x, w_ih, w_hh, b_ih, b_hh, h0=None, *, t_chunk=16):
    """x: (B, T, D); w_ih: (3H, D); w_hh: (3H, H); b_ih/b_hh: (3H,);
    h0: (1, B, H) or None. Returns (enc_out (B, T, H), hx (1, B, H))."""
    B, T, D = x.shape
    H = w_hh.shape[1]
    dtype = x.dtype

    Hp = _round_up(max(H, 1), 128)          # lane-aligned gates
    Bp = _round_up(max(B, 1), 8)            # sublane-aligned batch

    # ---- batch-block selection (vreg-pressure bound + v7x 2-TC split) ---------
    n_cores = _num_tensorcores()
    BB_MAX = 32                              # keep per-block live set within 64 vregs
    if Bp > BB_MAX:
        BB = BB_MAX
        Bp = _round_up(Bp, BB)
        num_b_blocks = Bp // BB
    elif n_cores >= 2 and Bp >= 16 and Bp % 16 == 0:
        num_b_blocks = 2                     # v7x: one batch block per TensorCore
        BB = Bp // 2
    else:
        num_b_blocks = 1                     # single-TC (v5e/v6e): never serialize
        BB = Bp

    # ---- time chunking (time-major -> no multiple-of-8 constraint) ------------
    t_chunk_eff = max(1, min(int(t_chunk), T))
    Tp = _round_up(T, t_chunk_eff)
    num_t_chunks = Tp // t_chunk_eff

    # ---- hoisted input projection: one big MXU-friendly matmul (XLA) ----------
    wih_p = _pad_gate_cols(jnp.transpose(w_ih), H, Hp)                # (D, 3Hp)
    # fold b_hh[r], b_hh[z] into the input-side bias; keep b_hh[n] separate
    b_gate = jnp.concatenate([b_ih[0:H] + b_hh[0:H],
                              b_ih[H:2 * H] + b_hh[H:2 * H],
                              b_ih[2 * H:3 * H]])
    b_gate_p = _pad_gate_cols(b_gate, H, Hp)                          # (3Hp,)
    bhn_p = jnp.pad(b_hh[2 * H:3 * H], (0, Hp - H)).reshape(1, Hp).astype(jnp.float32)

    # time-major gi; bias added in f32 BEFORE the cast back to the activation dtype
    gi = jnp.einsum("btd,dh->tbh", x, wih_p.astype(dtype),
                    preferred_element_type=jnp.float32)               # (T, B, 3Hp) f32
    gi = (gi + b_gate_p.astype(jnp.float32)).astype(dtype)
    gi = jnp.pad(gi, ((0, Tp - T), (0, Bp - B), (0, 0)))              # (Tp, Bp, 3Hp)

    whh_p = _pad_gate_cols(jnp.transpose(w_hh), H, Hp)                # (H, 3Hp)
    whh_p = jnp.pad(whh_p, ((0, Hp - H), (0, 0))).astype(w_hh.dtype)  # (Hp, 3Hp)

    if h0 is None:
        h0_p = jnp.zeros((Bp, Hp), jnp.float32)
    else:
        h0_p = jnp.pad(h0[0].astype(jnp.float32), ((0, Bp - B), (0, Hp - H)))

    # ---- explicit VMEM budget (valid on v5e/v6e/v7x, <= 64 MiB) ---------------
    isz = jnp.dtype(dtype).itemsize
    wsz = jnp.dtype(w_hh.dtype).itemsize
    blk_bytes = (2 * t_chunk_eff * BB * 3 * Hp * isz        # gi (double-buffered)
                 + 2 * t_chunk_eff * BB * Hp * isz          # out (double-buffered)
                 + 2 * Hp * 3 * Hp * wsz                    # W_hh^T (double-buffered)
                 + 2 * 1 * Hp * 4                           # bhn
                 + 2 * BB * Hp * 4                          # h0
                 + BB * Hp * 4)                             # h scratch
    vmem_limit = int(min(64 * 1024 * 1024,
                         max(16 * 1024 * 1024, int(blk_bytes * 1.5) + (1 << 20))))
    # TODO(synk): for very large H on v7x, single-buffer W_hh (pipeline_mode=pl.Buffered(1))
    # and/or store it in bf16 to fit the 64 MiB per-TC VMEM.

    out_full = pl.pallas_call(
        _gru_kernel,
        out_shape=jax.ShapeDtypeStruct((Tp, Bp, Hp), dtype),
        grid_spec=pltpu.PrefetchScalarGridSpec(
            num_scalar_prefetch=0,
            grid=(num_b_blocks, num_t_chunks),
            in_specs=[
                pl.BlockSpec((t_chunk_eff, BB, 3 * Hp), lambda b, t: (t, b, 0)),  # gi
                pl.BlockSpec((Hp, 3 * Hp), lambda b, t: (0, 0)),                  # W_hh^T
                pl.BlockSpec((1, Hp), lambda b, t: (0, 0)),                       # bhn
                pl.BlockSpec((BB, Hp), lambda b, t: (b, 0)),                      # h0
            ],
            out_specs=pl.BlockSpec((t_chunk_eff, BB, Hp), lambda b, t: (t, b, 0)),
            scratch_shapes=[pltpu.VMEM((BB, Hp), jnp.float32)],
        ),
        compiler_params=pltpu.CompilerParams(
            dimension_semantics=("parallel", "arbitrary"),   # time is sequential
            vmem_limit_bytes=vmem_limit),
    )(gi, whh_p, bhn_p, h0_p)

    enc_out = jnp.transpose(out_full[:T, :B, :H], (1, 0, 2))          # (B, T, H)
    hx = out_full[T - 1, :B, :H][None]       # == h_n for 1-layer unidirectional
    return enc_out, hx


# TODO(synk): the non_pad_mask (pack_padded_sequence) branch of the PyTorch module
# is not implemented; only the non_pad_mask=None path is reproduced.


def _reference_gru(x, w_ih, w_hh, b_ih, b_hh):
    """Pure-JAX reference (lax.scan) mirroring torch.nn.GRU."""
    B, T, D = x.shape
    H = w_hh.shape[1]
    wir, wiz, win = jnp.split(w_ih, 3, axis=0)
    whr, whz, whn = jnp.split(w_hh, 3, axis=0)
    bir, biz, bin_ = jnp.split(b_ih, 3)
    bhr, bhz, bhn = jnp.split(b_hh, 3)

    def step(h, x_t):
        r = jax.nn.sigmoid(x_t @ wir.T + bir + h @ whr.T + bhr)
        z = jax.nn.sigmoid(x_t @ wiz.T + biz + h @ whz.T + bhz)
        n = jnp.tanh(x_t @ win.T + bin_ + r * (h @ whn.T + bhn))
        h_new = (1.0 - z) * n + z * h
        return h_new, h_new

    h0 = jnp.zeros((B, H), x.dtype)
    h_last, outs = jax.lax.scan(step, h0, jnp.transpose(x, (1, 0, 2)))
    return jnp.transpose(outs, (1, 0, 2)), h_last[None]


def _init_params(key, input_size, hidden_size):
    """Deterministic init mirroring GRU.init_param: orthogonal for >=2D, normal for 1D."""
    k1, k2, k3, k4 = jax.random.split(key, 4)
    orth = jax.nn.initializers.orthogonal()
    w_ih = orth(k1, (3 * hidden_size, input_size), jnp.float32)
    w_hh = orth(k2, (3 * hidden_size, hidden_size), jnp.float32)
    b_ih = jax.random.normal(k3, (3 * hidden_size,), jnp.float32)
    b_hh = jax.random.normal(k4, (3 * hidden_size,), jnp.float32)
    return w_ih, w_hh, b_ih, b_hh


if __name__ == "__main__":
    B, T, D, H = 2, 8, 16, 32   # batch, seq_len, embed_dim (input_size), hidden_size

    key = jax.random.PRNGKey(0)
    kx, kp = jax.random.split(key)
    x = jax.random.normal(kx, (B, T, D), jnp.float32)
    w_ih, w_hh, b_ih, b_hh = _init_params(kp, D, H)

    enc_out, hx = gru_forward(x, w_ih, w_hh, b_ih, b_hh)
    jax.block_until_ready((enc_out, hx))

    # correctness check against a pure-JAX GRU reference
    ref_out, ref_hx = _reference_gru(x, w_ih, w_hh, b_ih, b_hh)
    assert enc_out.shape == (B, T, H) and hx.shape == (1, B, H)
    assert jnp.allclose(enc_out, ref_out, atol=5e-5, rtol=5e-5)
    assert jnp.allclose(hx, ref_hx, atol=5e-5, rtol=5e-5)

    print("KERNEL_OK")
</pallas_src>

<mosaic_0001>
module attributes {stable_mosaic.version = 11 : i64} {
  func.func @_gru_kernel(%arg0: i32, %arg1: i32, %arg2: memref<8x8x384xf32, #tpu.memory_space<vmem>>, %arg3: memref<128x384xf32, #tpu.memory_space<vmem>>, %arg4: memref<1x128xf32, #tpu.memory_space<vmem>>, %arg5: memref<8x128xf32, #tpu.memory_space<vmem>>, %arg6: memref<8x8x128xf32, #tpu.memory_space<vmem>>, %arg7: memref<8x128xf32, #tpu.memory_space<vmem>>) attributes {dimension_semantics = [#tpu.dimension_semantics<parallel>, #tpu.dimension_semantics<arbitrary>], iteration_bounds = array<i64: 1, 1>, scalar_prefetch = 0 : i64, scratch_operands = 1 : i64, tpu.core_type = #tpu.core_type<tc>, window_params = [{transform_indices = @transform_0, window_bounds = array<i64: 8, 8, 384>}, {pipeline_mode = #tpu.pipeline_mode<synchronous>, transform_indices = @transform_1, window_bounds = array<i64: 128, 384>}, {pipeline_mode = #tpu.pipeline_mode<synchronous>, transform_indices = @transform_2, window_bounds = array<i64: 1, 128>}, {transform_indices = @transform_3, window_bounds = array<i64: 8, 128>}, {transform_indices = @transform_4, window_bounds = array<i64: 8, 8, 128>}]} {
    %c0_i32 = arith.constant 0 : i32
    %0 = arith.cmpi eq, %arg1, %c0_i32 : i32
    %1 = arith.extui %0 : i1 to i32
    %c0_i32_0 = arith.constant 0 : i32
    %2 = arith.cmpi ne, %1, %c0_i32_0 : i32
    scf.if %2 {
      %c0_104 = arith.constant 0 : index
      %c0_105 = arith.constant 0 : index
      %289 = vector.load %arg5[%c0_104, %c0_105] : memref<8x128xf32, #tpu.memory_space<vmem>>, vector<8x128xf32>
      %c0_106 = arith.constant 0 : index
      %c0_107 = arith.constant 0 : index
      %290 = vector.load %arg7[%c0_106, %c0_107] : memref<8x128xf32, #tpu.memory_space<vmem>>, vector<8x128xf32>
      tpu.vector_store %arg7[%c0_106, %c0_107], %289 {strides = array<i32>} : memref<8x128xf32, #tpu.memory_space<vmem>>, vector<8x128xf32>,
    } else {
    }
    %c0 = arith.constant 0 : index
    %c0_1 = arith.constant 0 : index
    %3 = vector.load %arg3[%c0, %c0_1] : memref<128x384xf32, #tpu.memory_space<vmem>>, vector<128x384xf32>
    %c0_2 = arith.constant 0 : index
    %c0_3 = arith.constant 0 : index
    %4 = vector.load %arg4[%c0_2, %c0_3] : memref<1x128xf32, #tpu.memory_space<vmem>>, vector<1x128xf32>
    %5 = vector.shape_cast %4 : vector<1x128xf32> to vector<1x128xf32>
    %6 = vector.broadcast %5 : vector<1x128xf32> to vector<8x128xf32>
    %c0_4 = arith.constant 0 : index
    %c0_5 = arith.constant 0 : index
    %7 = vector.load %arg7[%c0_4, %c0_5] : memref<8x128xf32, #tpu.memory_space<vmem>>, vector<8x128xf32>
    %c0_6 = arith.constant 0 : index
    %c0_7 = arith.constant 0 : index
    %c0_8 = arith.constant 0 : index
    %8 = vector.load %arg2[%c0_6, %c0_7, %c0_8] : memref<8x8x384xf32, #tpu.memory_space<vmem>>, vector<1x8x384xf32>
    %9 = vector.shape_cast %8 : vector<1x8x384xf32> to vector<8x384xf32>
    %cst = arith.constant dense<0.000000e+00> : vector<8x384xf32>
    %10 = tpu.matmul %7, %3, %cst {dimension_numbers = #tpu.dot_dimension_numbers<[1], [0], [0], [1], [0, 0, 1, 1], [], []>} : vector<8x128xf32>, vector<128x384xf32>, vector<8x384xf32> -> vector<8x384xf32>
    %11 = vector.extract_strided_slice %9 {offsets = [0, 0], sizes = [8, 128], strides = [1, 1]} : vector<8x384xf32> to vector<8x128xf32>
    %12 = vector.extract_strided_slice %10 {offsets = [0, 0], sizes = [8, 128], strides = [1, 1]} : vector<8x384xf32> to vector<8x128xf32>
    %13 = arith.addf %11, %12 : vector<8x128xf32>
    %cst_9 = arith.constant 5.000000e-01 : f32
    %14 = vector.broadcast %cst_9 : f32 to vector<8x128xf32>
    %15 = arith.mulf %14, %13 : vector<8x128xf32>
    %16 = math.tanh %15 : vector<8x128xf32>
    %cst_10 = arith.constant 5.000000e-01 : f32
    %17 = vector.broadcast %cst_10 : f32 to vector<8x128xf32>
    %18 = arith.mulf %17, %16 : vector<8x128xf32>
    %cst_11 = arith.constant 5.000000e-01 : f32
    %19 = vector.broadcast %cst_11 : f32 to vector<8x128xf32>
    %20 = arith.addf %18, %19 : vector<8x128xf32>
    %21 = vector.extract_strided_slice %9 {offsets = [0, 128], sizes = [8, 128], strides = [1, 1]} : vector<8x384xf32> to vector<8x128xf32>
    %22 = vector.extract_strided_slice %10 {offsets = [0, 128], sizes = [8, 128], strides = [1, 1]} : vector<8x384xf32> to vector<8x128xf32>
    %23 = arith.addf %21, %22 : vector<8x128xf32>
    %cst_12 = arith.constant 5.000000e-01 : f32
    %24 = vector.broadcast %cst_12 : f32 to vector<8x128xf32>
    %25 = arith.mulf %24, %23 : vector<8x128xf32>
    %26 = math.tanh %25 : vector<8x128xf32>
    %cst_13 = arith.constant 5.000000e-01 : f32
    %27 = vector.broadcast %cst_13 : f32 to vector<8x128xf32>
    %28 = arith.mulf %27, %26 : vector<8x128xf32>
    %cst_14 = arith.constant 5.000000e-01 : f32
    %29 = vector.broadcast %cst_14 : f32 to vector<8x128xf32>
    %30 = arith.addf %28, %29 : vector<8x128xf32>
    %31 = vector.extract_strided_slice %9 {offsets = [0, 256], sizes = [8, 128], strides = [1, 1]} : vector<8x384xf32> to vector<8x128xf32>
    %32 = vector.extract_strided_slice %10 {offsets = [0, 256], sizes = [8, 128], strides = [1, 1]} : vector<8x384xf32> to vector<8x128xf32>
    %33 = arith.addf %32, %6 : vector<8x128xf32>
    %34 = arith.mulf %20, %33 : vector<8x128xf32>
    %35 = arith.addf %31, %34 : vector<8x128xf32>
    %36 = math.tanh %35 : vector<8x128xf32>
    %37 = arith.subf %7, %36 : vector<8x128xf32>
    %38 = arith.mulf %30, %37 : vector<8x128xf32>
    %39 = arith.addf %36, %38 : vector<8x128xf32>
    %c0_15 = arith.constant 0 : index
    %c0_16 = arith.constant 0 : index
    %c0_17 = arith.constant 0 : index
    %40 = vector.load %arg6[%c0_15, %c0_16, %c0_17] : memref<8x8x128xf32, #tpu.memory_space<vmem>>, vector<1x8x128xf32>
    %41 = vector.shape_cast %40 : vector<1x8x128xf32> to vector<8x128xf32>
    %42 = vector.shape_cast %39 : vector<8x128xf32> to vector<1x8x128xf32>
    tpu.vector_store %arg6[%c0_15, %c0_16, %c0_17], %42 {strides = array<i32>} : memref<8x8x128xf32, #tpu.memory_space<vmem>>, vector<1x8x128xf32>,
    %c1 = arith.constant 1 : index
    %c0_18 = arith.constant 0 : index
    %c0_19 = arith.constant 0 : index
    %43 = vector.load %arg2[%c1, %c0_18, %c0_19] : memref<8x8x384xf32, #tpu.memory_space<vmem>>, vector<1x8x384xf32>
    %44 = vector.shape_cast %43 : vector<1x8x384xf32> to vector<8x384xf32>
    %cst_20 = arith.constant dense<0.000000e+00> : vector<8x384xf32>
    %45 = tpu.matmul %39, %3, %cst_20 {dimension_numbers = #tpu.dot_dimension_numbers<[1], [0], [0], [1], [0, 0, 1, 1], [], []>} : vector<8x128xf32>, vector<128x384xf32>, vector<8x384xf32> -> vector<8x384xf32>
    %46 = vector.extract_strided_slice %44 {offsets = [0, 0], sizes = [8, 128], strides = [1, 1]} : vector<8x384xf32> to vector<8x128xf32>
    %47 = vector.extract_strided_slice %45 {offsets = [0, 0], sizes = [8, 128], strides = [1, 1]} : vector<8x384xf32> to vector<8x128xf32>
    %48 = arith.addf %46, %47 : vector<8x128xf32>
    %cst_21 = arith.constant 5.000000e-01 : f32
    %49 = vector.broadcast %cst_21 : f32 to vector<8x128xf32>
    %50 = arith.mulf %49, %48 : vector<8x128xf32>
    %51 = math.tanh %50 : vector<8x128xf32>
    %cst_22 = arith.constant 5.000000e-01 : f32
    %52 = vector.broadcast %cst_22 : f32 to vector<8x128xf32>
    %53 = arith.mulf %52, %51 : vector<8x128xf32>
    %cst_23 = arith.constant 5.000000e-01 : f32
    %54 = vector.broadcast %cst_23 : f32 to vector<8x128xf32>
    %55 = arith.addf %53, %54 : vector<8x128xf32>
    %56 = vector.extract_strided_slice %44 {offsets = [0, 128], sizes = [8, 128], strides = [1, 1]} : vector<8x384xf32> to vector<8x128xf32>
    %57 = vector.extract_strided_slice %45 {offsets = [0, 128], sizes = [8, 128], strides = [1, 1]} : vector<8x384xf32> to vector<8x128xf32>
    %58 = arith.addf %56, %57 : vector<8x128xf32>
    %cst_24 = arith.constant 5.000000e-01 : f32
    %59 = vector.broadcast %cst_24 : f32 to vector<8x128xf32>
    %60 = arith.mulf %59, %58 : vector<8x128xf32>
    %61 = math.tanh %60 : vector<8x128xf32>
    %cst_25 = arith.constant 5.000000e-01 : f32
    %62 = vector.broadcast %cst_25 : f32 to vector<8x128xf32>
    %63 = arith.mulf %62, %61 : vector<8x128xf32>
    %cst_26 = arith.constant 5.000000e-01 : f32
    %64 = vector.broadcast %cst_26 : f32 to vector<8x128xf32>
    %65 = arith.addf %63, %64 : vector<8x128xf32>
    %66 = vector.extract_strided_slice %44 {offsets = [0, 256], sizes = [8, 128], strides = [1, 1]} : vector<8x384xf32> to vector<8x128xf32>
    %67 = vector.extract_strided_slice %45 {offsets = [0, 256], sizes = [8, 128], strides = [1, 1]} : vector<8x384xf32> to vector<8x128xf32>
    %68 = arith.addf %67, %6 : vector<8x128xf32>
    %69 = arith.mulf %55, %68 : vector<8x128xf32>
    %70 = arith.addf %66, %69 : vector<8x128xf32>
    %71 = math.tanh %70 : vector<8x128xf32>
    %72 = arith.subf %39, %71 : vector<8x128xf32>
    %73 = arith.mulf %65, %72 : vector<8x128xf32>
    %74 = arith.addf %71, %73 : vector<8x128xf32>
    %c1_27 = arith.constant 1 : index
    %c0_28 = arith.constant 0 : index
    %c0_29 = arith.constant 0 : index
    %75 = vector.load %arg6[%c1_27, %c0_28, %c0_29] : memref<8x8x128xf32, #tpu.memory_space<vmem>>, vector<1x8x128xf32>
    %76 = vector.shape_cast %75 : vector<1x8x128xf32> to vector<8x128xf32>
    %77 = vector.shape_cast %74 : vector<8x128xf32> to vector<1x8x128xf32>
    tpu.vector_store %arg6[%c1_27, %c0_28, %c0_29], %77 {strides = array<i32>} : memref<8x8x128xf32, #tpu.memory_space<vmem>>, vector<1x8x128xf32>,
    %c2 = arith.constant 2 : index
    %c0_30 = arith.constant 0 : index
    %c0_31 = arith.constant 0 : index
    %78 = vector.load %arg2[%c2, %c0_30, %c0_31] : memref<8x8x384xf32, #tpu.memory_space<vmem>>, vector<1x8x384xf32>
    %79 = vector.shape_cast %78 : vector<1x8x384xf32> to vector<8x384xf32>
    %cst_32 = arith.constant dense<0.000000e+00> : vector<8x384xf32>
    %80 = tpu.matmul %74, %3, %cst_32 {dimension_numbers = #tpu.dot_dimension_numbers<[1], [0], [0], [1], [0, 0, 1, 1], [], []>} : vector<8x128xf32>, vector<128x384xf32>, vector<8x384xf32> -> vector<8x384xf32>
    %81 = vector.extract_strided_slice %79 {offsets = [0, 0], sizes = [8, 128], strides = [1, 1]} : vector<8x384xf32> to vector<8x128xf32>
    %82 = vector.extract_strided_slice %80 {offsets = [0, 0], sizes = [8, 128], strides = [1, 1]} : vector<8x384xf32> to vector<8x128xf32>
    %83 = arith.addf %81, %82 : vector<8x128xf32>
    %cst_33 = arith.constant 5.000000e-01 : f32
    %84 = vector.broadcast %cst_33 : f32 to vector<8x128xf32>
    %85 = arith.mulf %84, %83 : vector<8x128xf32>
    %86 = math.tanh %85 : vector<8x128xf32>
    %cst_34 = arith.constant 5.000000e-01 : f32
    %87 = vector.broadcast %cst_34 : f32 to vector<8x128xf32>
    %88 = arith.mulf %87, %86 : vector<8x128xf32>
    %cst_35 = arith.constant 5.000000e-01 : f32
    %89 = vector.broadcast %cst_35 : f32 to vector<8x128xf32>
    %90 = arith.addf %88, %89 : vector<8x128xf32>
    %91 = vector.extract_strided_slice %79 {offsets = [0, 128], sizes = [8, 128], strides = [1, 1]} : vector<8x384xf32> to vector<8x128xf32>
    %92 = vector.extract_strided_slice %80 {offsets = [0, 128], sizes = [8, 128], strides = [1, 1]} : vector<8x384xf32> to vector<8x128xf32>
    %93 = arith.addf %91, %92 : vector<8x128xf32>
    %cst_36 = arith.constant 5.000000e-01 : f32
    %94 = vector.broadcast %cst_36 : f32 to vector<8x128xf32>
    %95 = arith.mulf %94, %93 : vector<8x128xf32>
    %96 = math.tanh %95 : vector<8x128xf32>
    %cst_37 = arith.constant 5.000000e-01 : f32
    %97 = vector.broadcast %cst_37 : f32 to vector<8x128xf32>
    %98 = arith.mulf %97, %96 : vector<8x128xf32>
    %cst_38 = arith.constant 5.000000e-01 : f32
    %99 = vector.broadcast %cst_38 : f32 to vector<8x128xf32>
    %100 = arith.addf %98, %99 : vector<8x128xf32>
    %101 = vector.extract_strided_slice %79 {offsets = [0, 256], sizes = [8, 128], strides = [1, 1]} : vector<8x384xf32> to vector<8x128xf32>
    %102 = vector.extract_strided_slice %80 {offsets = [0, 256], sizes = [8, 128], strides = [1, 1]} : vector<8x384xf32> to vector<8x128xf32>
    %103 = arith.addf %102, %6 : vector<8x128xf32>
    %104 = arith.mulf %90, %103 : vector<8x128xf32>
    %105 = arith.addf %101, %104 : vector<8x128xf32>
    %106 = math.tanh %105 : vector<8x128xf32>
    %107 = arith.subf %74, %106 : vector<8x128xf32>
    %108 = arith.mulf %100, %107 : vector<8x128xf32>
    %109 = arith.addf %106, %108 : vector<8x128xf32>
    %c2_39 = arith.constant 2 : index
    %c0_40 = arith.constant 0 : index
    %c0_41 = arith.constant 0 : index
    %110 = vector.load %arg6[%c2_39, %c0_40, %c0_41] : memref<8x8x128xf32, #tpu.memory_space<vmem>>, vector<1x8x128xf32>
    %111 = vector.shape_cast %110 : vector<1x8x128xf32> to vector<8x128xf32>
    %112 = vector.shape_cast %109 : vector<8x128xf32> to vector<1x8x128xf32>
    tpu.vector_store %arg6[%c2_39, %c0_40, %c0_41], %112 {strides = array<i32>} : memref<8x8x128xf32, #tpu.memory_space<vmem>>, vector<1x8x128xf32>,
    %c3 = arith.constant 3 : index
    %c0_42 = arith.constant 0 : index
    %c0_43 = arith.constant 0 : index
    %113 = vector.load %arg2[%c3, %c0_42, %c0_43] : memref<8x8x384xf32, #tpu.memory_space<vmem>>, vector<1x8x384xf32>
    %114 = vector.shape_cast %113 : vector<1x8x384xf32> to vector<8x384xf32>
    %cst_44 = arith.constant dense<0.000000e+00> : vector<8x384xf32>
    %115 = tpu.matmul %109, %3, %cst_44 {dimension_numbers = #tpu.dot_dimension_numbers<[1], [0], [0], [1], [0, 0, 1, 1], [], []>} : vector<8x128xf32>, vector<128x384xf32>, vector<8x384xf32> -> vector<8x384xf32>
    %116 = vector.extract_strided_slice %114 {offsets = [0, 0], sizes = [8, 128], strides = [1, 1]} : vector<8x384xf32> to vector<8x128xf32>
    %117 = vector.extract_strided_slice %115 {offsets = [0, 0], sizes = [8, 128], strides = [1, 1]} : vector<8x384xf32> to vector<8x128xf32>
    %118 = arith.addf %116, %117 : vector<8x128xf32>
    %cst_45 = arith.constant 5.000000e-01 : f32
    %119 = vector.broadcast %cst_45 : f32 to vector<8x128xf32>
    %120 = arith.mulf %119, %118 : vector<8x128xf32>
    %121 = math.tanh %120 : vector<8x128xf32>
    %cst_46 = arith.constant 5.000000e-01 : f32
    %122 = vector.broadcast %cst_46 : f32 to vector<8x128xf32>
    %123 = arith.mulf %122, %121 : vector<8x128xf32>
    %cst_47 = arith.constant 5.000000e-01 : f32
    %124 = vector.broadcast %cst_47 : f32 to vector<8x128xf32>
    %125 = arith.addf %123, %124 : vector<8x128xf32>
    %126 = vector.extract_strided_slice %114 {offsets = [0, 128], sizes = [8, 128], strides = [1, 1]} : vector<8x384xf32> to vector<8x128xf32>
    %127 = vector.extract_strided_slice %115 {offsets = [0, 128], sizes = [8, 128], strides = [1, 1]} : vector<8x384xf32> to vector<8x128xf32>
    %128 = arith.addf %126, %127 : vector<8x128xf32>
    %cst_48 = arith.constant 5.000000e-01 : f32
    %129 = vector.broadcast %cst_48 : f32 to vector<8x128xf32>
    %130 = arith.mulf %129, %128 : vector<8x128xf32>
    %131 = math.tanh %130 : vector<8x128xf32>
    %cst_49 = arith.constant 5.000000e-01 : f32
    %132 = vector.broadcast %cst_49 : f32 to vector<8x128xf32>
    %133 = arith.mulf %132, %131 : vector<8x128xf32>
    %cst_50 = arith.constant 5.000000e-01 : f32
    %134 = vector.broadcast %cst_50 : f32 to vector<8x128xf32>
    %135 = arith.addf %133, %134 : vector<8x128xf32>
    %136 = vector.extract_strided_slice %114 {offsets = [0, 256], sizes = [8, 128], strides = [1, 1]} : vector<8x384xf32> to vector<8x128xf32>
    %137 = vector.extract_strided_slice %115 {offsets = [0, 256], sizes = [8, 128], strides = [1, 1]} : vector<8x384xf32> to vector<8x128xf32>
    %138 = arith.addf %137, %6 : vector<8x128xf32>
    %139 = arith.mulf %125, %138 : vector<8x128xf32>
    %140 = arith.addf %136, %139 : vector<8x128xf32>
    %141 = math.tanh %140 : vector<8x128xf32>
    %142 = arith.subf %109, %141 : vector<8x128xf32>
    %143 = arith.mulf %135, %142 : vector<8x128xf32>
    %144 = arith.addf %141, %143 : vector<8x128xf32>
    %c3_51 = arith.constant 3 : index
    %c0_52 = arith.constant 0 : index
    %c0_53 = arith.constant 0 : index
    %145 = vector.load %arg6[%c3_51, %c0_52, %c0_53] : memref<8x8x128xf32, #tpu.memory_space<vmem>>, vector<1x8x128xf32>
    %146 = vector.shape_cast %145 : vector<1x8x128xf32> to vector<8x128xf32>
    %147 = vector.shape_cast %144 : vector<8x128xf32> to vector<1x8x128xf32>
    tpu.vector_store %arg6[%c3_51, %c0_52, %c0_53], %147 {strides = array<i32>} : memref<8x8x128xf32, #tpu.memory_space<vmem>>, vector<1x8x128xf32>,
    %c4 = arith.constant 4 : index
    %c0_54 = arith.constant 0 : index
    %c0_55 = arith.constant 0 : index
    %148 = vector.load %arg2[%c4, %c0_54, %c0_55] : memref<8x8x384xf32, #tpu.memory_space<vmem>>, vector<1x8x384xf32>
    %149 = vector.shape_cast %148 : vector<1x8x384xf32> to vector<8x384xf32>
    %cst_56 = arith.constant dense<0.000000e+00> : vector<8x384xf32>
    %150 = tpu.matmul %144, %3, %cst_56 {dimension_numbers = #tpu.dot_dimension_numbers<[1], [0], [0], [1], [0, 0, 1, 1], [], []>} : vector<8x128xf32>, vector<128x384xf32>, vector<8x384xf32> -> vector<8x384xf32>
    %151 = vector.extract_strided_slice %149 {offsets = [0, 0], sizes = [8, 128], strides = [1, 1]} : vector<8x384xf32> to vector<8x128xf32>
    %152 = vector.extract_strided_slice %150 {offsets = [0, 0], sizes = [8, 128], strides = [1, 1]} : vector<8x384xf32> to vector<8x128xf32>
    %153 = arith.addf %151, %152 : vector<8x128xf32>
    %cst_57 = arith.constant 5.000000e-01 : f32
    %154 = vector.broadcast %cst_57 : f32 to vector<8x128xf32>
    %155 = arith.mulf %154, %153 : vector<8x128xf32>
    %156 = math.tanh %155 : vector<8x128xf32>
    %cst_58 = arith.constant 5.000000e-01 : f32
    %157 = vector.broadcast %cst_58 : f32 to vector<8x128xf32>
    %158 = arith.mulf %157, %156 : vector<8x128xf32>
    %cst_59 = arith.constant 5.000000e-01 : f32
    %159 = vector.broadcast %cst_59 : f32 to vector<8x128xf32>
    %160 = arith.addf %158, %159 : vector<8x128xf32>
    %161 = vector.extract_strided_slice %149 {offsets = [0, 128], sizes = [8, 128], strides = [1, 1]} : vector<8x384xf32> to vector<8x128xf32>
    %162 = vector.extract_strided_slice %150 {offsets = [0, 128], sizes = [8, 128], strides = [1, 1]} : vector<8x384xf32> to vector<8x128xf32>
    %163 = arith.addf %161, %162 : vector<8x128xf32>
    %cst_60 = arith.constant 5.000000e-01 : f32
    %164 = vector.broadcast %cst_60 : f32 to vector<8x128xf32>
    %165 = arith.mulf %164, %163 : vector<8x128xf32>
    %166 = math.tanh %165 : vector<8x128xf32>
    %cst_61 = arith.constant 5.000000e-01 : f32
    %167 = vector.broadcast %cst_61 : f32 to vector<8x128xf32>
    %168 = arith.mulf %167, %166 : vector<8x128xf32>
    %cst_62 = arith.constant 5.000000e-01 : f32
    %169 = vector.broadcast %cst_62 : f32 to vector<8x128xf32>
    %170 = arith.addf %168, %169 : vector<8x128xf32>
    %171 = vector.extract_strided_slice %149 {offsets = [0, 256], sizes = [8, 128], strides = [1, 1]} : vector<8x384xf32> to vector<8x128xf32>
    %172 = vector.extract_strided_slice %150 {offsets = [0, 256], sizes = [8, 128], strides = [1, 1]} : vector<8x384xf32> to vector<8x128xf32>
    %173 = arith.addf %172, %6 : vector<8x128xf32>
    %174 = arith.mulf %160, %173 : vector<8x128xf32>
    %175 = arith.addf %171, %174 : vector<8x128xf32>
    %176 = math.tanh %175 : vector<8x128xf32>
    %177 = arith.subf %144, %176 : vector<8x128xf32>
    %178 = arith.mulf %170, %177 : vector<8x128xf32>
    %179 = arith.addf %176, %178 : vector<8x128xf32>
    %c4_63 = arith.constant 4 : index
    %c0_64 = arith.constant 0 : index
    %c0_65 = arith.constant 0 : index
    %180 = vector.load %arg6[%c4_63, %c0_64, %c0_65] : memref<8x8x128xf32, #tpu.memory_space<vmem>>, vector<1x8x128xf32>
    %181 = vector.shape_cast %180 : vector<1x8x128xf32> to vector<8x128xf32>
    %182 = vector.shape_cast %179 : vector<8x128xf32> to vector<1x8x128xf32>
    tpu.vector_store %arg6[%c4_63, %c0_64, %c0_65], %182 {strides = array<i32>} : memref<8x8x128xf32, #tpu.memory_space<vmem>>, vector<1x8x128xf32>,
    %c5 = arith.constant 5 : index
    %c0_66 = arith.constant 0 : index
    %c0_67 = arith.constant 0 : index
    %183 = vector.load %arg2[%c5, %c0_66, %c0_67] : memref<8x8x384xf32, #tpu.memory_space<vmem>>, vector<1x8x384xf32>
    %184 = vector.shape_cast %183 : vector<1x8x384xf32> to vector<8x384xf32>
    %cst_68 = arith.constant dense<0.000000e+00> : vector<8x384xf32>
    %185 = tpu.matmul %179, %3, %cst_68 {dimension_numbers = #tpu.dot_dimension_numbers<[1], [0], [0], [1], [0, 0, 1, 1], [], []>} : vector<8x128xf32>, vector<128x384xf32>, vector<8x384xf32> -> vector<8x384xf32>
    %186 = vector.extract_strided_slice %184 {offsets = [0, 0], sizes = [8, 128], strides = [1, 1]} : vector<8x384xf32> to vector<8x128xf32>
    %187 = vector.extract_strided_slice %185 {offsets = [0, 0], sizes = [8, 128], strides = [1, 1]} : vector<8x384xf32> to vector<8x128xf32>
    %188 = arith.addf %186, %187 : vector<8x128xf32>
    %cst_69 = arith.constant 5.000000e-01 : f32
    %189 = vector.broadcast %cst_69 : f32 to vector<8x128xf32>
    %190 = arith.mulf %189, %188 : vector<8x128xf32>
    %191 = math.tanh %190 : vector<8x128xf32>
    %cst_70 = arith.constant 5.000000e-01 : f32
    %192 = vector.broadcast %cst_70 : f32 to vector<8x128xf32>
    %193 = arith.mulf %192, %191 : vector<8x128xf32>
    %cst_71 = arith.constant 5.000000e-01 : f32
    %194 = vector.broadcast %cst_71 : f32 to vector<8x128xf32>
    %195 = arith.addf %193, %194 : vector<8x128xf32>
    %196 = vector.extract_strided_slice %184 {offsets = [0, 128], sizes = [8, 128], strides = [1, 1]} : vector<8x384xf32> to vector<8x128xf32>
    %197 = vector.extract_strided_slice %185 {offsets = [0, 128], sizes = [8, 128], strides = [1, 1]} : vector<8x384xf32> to vector<8x128xf32>
    %198 = arith.addf %196, %197 : vector<8x128xf32>
    %cst_72 = arith.constant 5.000000e-01 : f32
    %199 = vector.broadcast %cst_72 : f32 to vector<8x128xf32>
    %200 = arith.mulf %199, %198 : vector<8x128xf32>
    %201 = math.tanh %200 : vector<8x128xf32>
    %cst_73 = arith.constant 5.000000e-01 : f32
    %202 = vector.broadcast %cst_73 : f32 to vector<8x128xf32>
    %203 = arith.mulf %202, %201 : vector<8x128xf32>
    %cst_74 = arith.constant 5.000000e-01 : f32
    %204 = vector.broadcast %cst_74 : f32 to vector<8x128xf32>
    %205 = arith.addf %203, %204 : vector<8x128xf32>
    %206 = vector.extract_strided_slice %184 {offsets = [0, 256], sizes = [8, 128], strides = [1, 1]} : vector<8x384xf32> to vector<8x128xf32>
    %207 = vector.extract_strided_slice %185 {offsets = [0, 256], sizes = [8, 128], strides = [1, 1]} : vector<8x384xf32> to vector<8x128xf32>
    %208 = arith.addf %207, %6 : vector<8x128xf32>
    %209 = arith.mulf %195, %208 : vector<8x128xf32>
    %210 = arith.addf %206, %209 : vector<8x128xf32>
    %211 = math.tanh %210 : vector<8x128xf32>
    %212 = arith.subf %179, %211 : vector<8x128xf32>
    %213 = arith.mulf %205, %212 : vector<8x128xf32>
    %214 = arith.addf %211, %213 : vector<8x128xf32>
    %c5_75 = arith.constant 5 : index
    %c0_76 = arith.constant 0 : index
    %c0_77 = arith.constant 0 : index
    %215 = vector.load %arg6[%c5_75, %c0_76, %c0_77] : memref<8x8x128xf32, #tpu.memory_space<vmem>>, vector<1x8x128xf32>
    %216 = vector.shape_cast %215 : vector<1x8x128xf32> to vector<8x128xf32>
    %217 = vector.shape_cast %214 : vector<8x128xf32> to vector<1x8x128xf32>
    tpu.vector_store %arg6[%c5_75, %c0_76, %c0_77], %217 {strides = array<i32>} : memref<8x8x128xf32, #tpu.memory_space<vmem>>, vector<1x8x128xf32>,
    %c6 = arith.constant 6 : index
    %c0_78 = arith.constant 0 : index
    %c0_79 = arith.constant 0 : index
    %218 = vector.load %arg2[%c6, %c0_78, %c0_79] : memref<8x8x384xf32, #tpu.memory_space<vmem>>, vector<1x8x384xf32>
    %219 = vector.shape_cast %218 : vector<1x8x384xf32> to vector<8x384xf32>
    %cst_80 = arith.constant dense<0.000000e+00> : vector<8x384xf32>
    %220 = tpu.matmul %214, %3, %cst_80 {dimension_numbers = #tpu.dot_dimension_numbers<[1], [0], [0], [1], [0, 0, 1, 1], [], []>} : vector<8x128xf32>, vector<128x384xf32>, vector<8x384xf32> -> vector<8x384xf32>
    %221 = vector.extract_strided_slice %219 {offsets = [0, 0], sizes = [8, 128], strides = [1, 1]} : vector<8x384xf32> to vector<8x128xf32>
    %222 = vector.extract_strided_slice %220 {offsets = [0, 0], sizes = [8, 128], strides = [1, 1]} : vector<8x384xf32> to vector<8x128xf32>
    %223 = arith.addf %221, %222 : vector<8x128xf32>
    %cst_81 = arith.constant 5.000000e-01 : f32
    %224 = vector.broadcast %cst_81 : f32 to vector<8x128xf32>
    %225 = arith.mulf %224, %223 : vector<8x128xf32>
    %226 = math.tanh %225 : vector<8x128xf32>
    %cst_82 = arith.constant 5.000000e-01 : f32
    %227 = vector.broadcast %cst_82 : f32 to vector<8x128xf32>
    %228 = arith.mulf %227, %226 : vector<8x128xf32>
    %cst_83 = arith.constant 5.000000e-01 : f32
    %229 = vector.broadcast %cst_83 : f32 to vector<8x128xf32>
    %230 = arith.addf %228, %229 : vector<8x128xf32>
    %231 = vector.extract_strided_slice %219 {offsets = [0, 128], sizes = [8, 128], strides = [1, 1]} : vector<8x384xf32> to vector<8x128xf32>
    %232 = vector.extract_strided_slice %220 {offsets = [0, 128], sizes = [8, 128], strides = [1, 1]} : vector<8x384xf32> to vector<8x128xf32>
    %233 = arith.addf %231, %232 : vector<8x128xf32>
    %cst_84 = arith.constant 5.000000e-01 : f32
    %234 = vector.broadcast %cst_84 : f32 to vector<8x128xf32>
    %235 = arith.mulf %234, %233 : vector<8x128xf32>
    %236 = math.tanh %235 : vector<8x128xf32>
    %cst_85 = arith.constant 5.000000e-01 : f32
    %237 = vector.broadcast %cst_85 : f32 to vector<8x128xf32>
    %238 = arith.mulf %237, %236 : vector<8x128xf32>
    %cst_86 = arith.constant 5.000000e-01 : f32
    %239 = vector.broadcast %cst_86 : f32 to vector<8x128xf32>
    %240 = arith.addf %238, %239 : vector<8x128xf32>
    %241 = vector.extract_strided_slice %219 {offsets = [0, 256], sizes = [8, 128], strides = [1, 1]} : vector<8x384xf32> to vector<8x128xf32>
    %242 = vector.extract_strided_slice %220 {offsets = [0, 256], sizes = [8, 128], strides = [1, 1]} : vector<8x384xf32> to vector<8x128xf32>
    %243 = arith.addf %242, %6 : vector<8x128xf32>
    %244 = arith.mulf %230, %243 : vector<8x128xf32>
    %245 = arith.addf %241, %244 : vector<8x128xf32>
    %246 = math.tanh %245 : vector<8x128xf32>
    %247 = arith.subf %214, %246 : vector<8x128xf32>
    %248 = arith.mulf %240, %247 : vector<8x128xf32>
    %249 = arith.addf %246, %248 : vector<8x128xf32>
    %c6_87 = arith.constant 6 : index
    %c0_88 = arith.constant 0 : index
    %c0_89 = arith.constant 0 : index
    %250 = vector.load %arg6[%c6_87, %c0_88, %c0_89] : memref<8x8x128xf32, #tpu.memory_space<vmem>>, vector<1x8x128xf32>
    %251 = vector.shape_cast %250 : vector<1x8x128xf32> to vector<8x128xf32>
    %252 = vector.shape_cast %249 : vector<8x128xf32> to vector<1x8x128xf32>
    tpu.vector_store %arg6[%c6_87, %c0_88, %c0_89], %252 {strides = array<i32>} : memref<8x8x128xf32, #tpu.memory_space<vmem>>, vector<1x8x128xf32>,
    %c7 = arith.constant 7 : index
    %c0_90 = arith.constant 0 : index
    %c0_91 = arith.constant 0 : index
    %253 = vector.load %arg2[%c7, %c0_90, %c0_91] : memref<8x8x384xf32, #tpu.memory_space<vmem>>, vector<1x8x384xf32>
    %254 = vector.shape_cast %253 : vector<1x8x384xf32> to vector<8x384xf32>
    %cst_92 = arith.constant dense<0.000000e+00> : vector<8x384xf32>
    %255 = tpu.matmul %249, %3, %cst_92 {dimension_numbers = #tpu.dot_dimension_numbers<[1], [0], [0], [1], [0, 0, 1, 1], [], []>} : vector<8x128xf32>, vector<128x384xf32>, vector<8x384xf32> -> vector<8x384xf32>
    %256 = vector.extract_strided_slice %254 {offsets = [0, 0], sizes = [8, 128], strides = [1, 1]} : vector<8x384xf32> to vector<8x128xf32>
    %257 = vector.extract_strided_slice %255 {offsets = [0, 0], sizes = [8, 128], strides = [1, 1]} : vector<8x384xf32> to vector<8x128xf32>
    %258 = arith.addf %256, %257 : vector<8x128xf32>
    %cst_93 = arith.constant 5.000000e-01 : f32
    %259 = vector.broadcast %cst_93 : f32 to vector<8x128xf32>
    %260 = arith.mulf %259, %258 : vector<8x128xf32>
    %261 = math.tanh %260 : vector<8x128xf32>
    %cst_94 = arith.constant 5.000000e-01 : f32
    %262 = vector.broadcast %cst_94 : f32 to vector<8x128xf32>
    %263 = arith.mulf %262, %261 : vector<8x128xf32>
    %cst_95 = arith.constant 5.000000e-01 : f32
    %264 = vector.broadcast %cst_95 : f32 to vector<8x128xf32>
    %265 = arith.addf %263, %264 : vector<8x128xf32>
    %266 = vector.extract_strided_slice %254 {offsets = [0, 128], sizes = [8, 128], strides = [1, 1]} : vector<8x384xf32> to vector<8x128xf32>
    %267 = vector.extract_strided_slice %255 {offsets = [0, 128], sizes = [8, 128], strides = [1, 1]} : vector<8x384xf32> to vector<8x128xf32>
    %268 = arith.addf %266, %267 : vector<8x128xf32>
    %cst_96 = arith.constant 5.000000e-01 : f32
    %269 = vector.broadcast %cst_96 : f32 to vector<8x128xf32>
    %270 = arith.mulf %269, %268 : vector<8x128xf32>
    %271 = math.tanh %270 : vector<8x128xf32>
    %cst_97 = arith.constant 5.000000e-01 : f32
    %272 = vector.broadcast %cst_97 : f32 to vector<8x128xf32>
    %273 = arith.mulf %272, %271 : vector<8x128xf32>
    %cst_98 = arith.constant 5.000000e-01 : f32
    %274 = vector.broadcast %cst_98 : f32 to vector<8x128xf32>
    %275 = arith.addf %273, %274 : vector<8x128xf32>
    %276 = vector.extract_strided_slice %254 {offsets = [0, 256], sizes = [8, 128], strides = [1, 1]} : vector<8x384xf32> to vector<8x128xf32>
    %277 = vector.extract_strided_slice %255 {offsets = [0, 256], sizes = [8, 128], strides = [1, 1]} : vector<8x384xf32> to vector<8x128xf32>
    %278 = arith.addf %277, %6 : vector<8x128xf32>
    %279 = arith.mulf %265, %278 : vector<8x128xf32>
    %280 = arith.addf %276, %279 : vector<8x128xf32>
    %281 = math.tanh %280 : vector<8x128xf32>
    %282 = arith.subf %249, %281 : vector<8x128xf32>
    %283 = arith.mulf %275, %282 : vector<8x128xf32>
    %284 = arith.addf %281, %283 : vector<8x128xf32>
    %c7_99 = arith.constant 7 : index
    %c0_100 = arith.constant 0 : index
    %c0_101 = arith.constant 0 : index
    %285 = vector.load %arg6[%c7_99, %c0_100, %c0_101] : memref<8x8x128xf32, #tpu.memory_space<vmem>>, vector<1x8x128xf32>
    %286 = vector.shape_cast %285 : vector<1x8x128xf32> to vector<8x128xf32>
    %287 = vector.shape_cast %284 : vector<8x128xf32> to vector<1x8x128xf32>
    tpu.vector_store %arg6[%c7_99, %c0_100, %c0_101], %287 {strides = array<i32>} : memref<8x8x128xf32, #tpu.memory_space<vmem>>, vector<1x8x128xf32>,
    %c0_102 = arith.constant 0 : index
    %c0_103 = arith.constant 0 : index
    %288 = vector.load %arg7[%c0_102, %c0_103] : memref<8x128xf32, #tpu.memory_space<vmem>>, vector<8x128xf32>
    tpu.vector_store %arg7[%c0_102, %c0_103], %284 {strides = array<i32>} : memref<8x128xf32, #tpu.memory_space<vmem>>, vector<8x128xf32>,
    return
  }
  func.func @transform_0(%arg0: i32, %arg1: i32) -> (i32, i32, i32) {
    %c0_i32 = arith.constant 0 : i32
    %c0_i32_0 = arith.constant 0 : i32
    return %arg1, %arg0, %c0_i32 : i32, i32, i32
  }
  func.func @transform_1(%arg0: i32, %arg1: i32) -> (i32, i32) {
    %c0_i32 = arith.constant 0 : i32
    %c0_i32_0 = arith.constant 0 : i32
    %c0_i32_1 = arith.constant 0 : i32
    return %c0_i32, %c0_i32_0 : i32, i32
  }
  func.func @transform_2(%arg0: i32, %arg1: i32) -> (i32, i32) {
    %c0_i32 = arith.constant 0 : i32
    %c0_i32_0 = arith.constant 0 : i32
    %c0_i32_1 = arith.constant 0 : i32
    return %c0_i32, %c0_i32_0 : i32, i32
  }
  func.func @transform_3(%arg0: i32, %arg1: i32) -> (i32, i32) {
    %c0_i32 = arith.constant 0 : i32
    %c0_i32_0 = arith.constant 0 : i32
    return %arg0, %c0_i32 : i32, i32
  }
  func.func @transform_4(%arg0: i32, %arg1: i32) -> (i32, i32, i32) {
    %c0_i32 = arith.constant 0 : i32
    %c0_i32_0 = arith.constant 0 : i32
    return %arg1, %arg0, %c0_i32 : i32, i32, i32
  }
}

</mosaic_0001>

<bundles_post_ra>
// kernel: gru_forward.1
= control target key start
LH: loop header
LB: loop body
LE: loop exit
PB: predicated region body
PF: predicated region fallthrough
CT: control target
= control target key end

     0   :  { %s1651_s1 = inlined_call_operand.vmem [shape: f32[128,384], index: 1, kind: input, shape index: {}]   ;;  %s1652_s3 = inlined_call_operand.vmem [shape: f32[8,128], index: 3, kind: input, shape index: {}]   ;;  %s1653_s2 = inlined_call_operand.vmem [shape: f32[1,128], index: 2, kind: input, shape index: {}]   ;;  %s1654_s0 = inlined_call_operand.vmem [shape: f32[8,8,384], index: 0, kind: input, shape index: {}]   ;;  %s1655_s4 = inlined_call_operand.vmem [shape: f32[8,8,128], index: 4, kind: output, shape index: {}]  }
   0x1   :  { %v860_v0 = vld [vmem:[%s1651_s1 + $0x168] sm:$0xff]  ;;  %v865_v1 = vld [vmem:[%s1651_s1 + $0x150] sm:$0xff]  ;;  %v871_v2 = vld [vmem:[%s1651_s1 + $0x178] sm:$0xff] }
   0x2   :  { %79 = vmatpush.msra.mxu0 %v860_v0  ;;  %161 = vmatpush.msra.mxu3 %v860_v0  ;;  %v877_v3 = vld [vmem:[%s1651_s1 + $0x138] sm:$0xff]  ;;  %v883_v4 = vld [vmem:[%s1651_s1 + $0x160] sm:$0xff]  ;;  %v889_v5 = vld [vmem:[%s1651_s1 + $0x148] sm:$0xff] }
   0x3   :  { %119 = vmatpush.msra.mxu2 %v871_v2  ;;  %v894_v6 = vld [vmem:[%s1651_s1 + $0x170] sm:$0xff]  ;;  %v900_v7 = vld [vmem:[%s1651_s1 + $0x120] sm:$0xff]  ;;  %v907_v8 = vld [vmem:[%s1651_s1 + $0x158] sm:$0xff] }
   0x4   :  { %80 = vmatpush.msra.mxu0 %v865_v1  ;;  %162 = vmatpush.msra.mxu3 %v865_v1  ;;  %v913_v9 = vld [vmem:[%s1651_s1 + $0x130] sm:$0xff]  ;;  %v918_v10 = vld [vmem:[%s1651_s1 + $0x140] sm:$0xff]  ;;  %v924_v11 = vld [vmem:[%s1651_s1 + $0x108] sm:$0xff] }
   0x5   :  { %120 = vmatpush.msra.mxu2 %v883_v4  ;;  %99 = vmatpush.msra.mxu1 %v894_v6  ;;  %v932_v12 = vld [vmem:[%s1651_s1 + $0x118] sm:$0xff]  ;;  %v937_v13 = vld [vmem:[%s1651_s1 + $0x128] sm:$0xff]  ;;  %v943_v14 = vld [vmem:[%s1651_s1 + $0xf0] sm:$0xff] }
   0x6   :  { %81 = vmatpush.msra.mxu0 %v877_v3  ;;  %163 = vmatpush.msra.mxu3 %v877_v3  ;;  %v951_v15 = vld [vmem:[%s1651_s1 + $0x100] sm:$0xff]  ;;  %v956_v16 = vld [vmem:[%s1651_s1 + $0x110] sm:$0xff]  ;;  %v962_v17 = vld [vmem:[%s1651_s1 + $0xd8] sm:$0xff] }
   0x7   :  { %121 = vmatpush.msra.mxu2 %v889_v5  ;;  %100 = vmatpush.msra.mxu1 %v907_v8  ;;  %v970_v18 = vld [vmem:[%s1651_s1 + $0xe8] sm:$0xff]  ;;  %v975_v19 = vld [vmem:[%s1651_s1 + $0xf8] sm:$0xff]  ;;  %v981_v20 = vld [vmem:[%s1651_s1 + $0xc0] sm:$0xff] }
   0x8   :  { %82 = vmatpush.msra.mxu0 %v900_v7  ;;  %164 = vmatpush.msra.mxu3 %v900_v7  ;;  %v989_v21 = vld [vmem:[%s1651_s1 + $0xd0] sm:$0xff]  ;;  %v994_v22 = vld [vmem:[%s1651_s1 + $0xe0] sm:$0xff]  ;;  %v1000_v23 = vld [vmem:[%s1651_s1 + $0xa8] sm:$0xff] }
   0x9   :  { %122 = vmatpush.msra.mxu2 %v913_v9  ;;  %101 = vmatpush.msra.mxu1 %v918_v10  ;;  %v1008_v24 = vld [vmem:[%s1651_s1 + $0xb8] sm:$0xff]  ;;  %v1013_v25 = vld [vmem:[%s1651_s1 + $0xc8] sm:$0xff]  ;;  %v1019_v26 = vld [vmem:[%s1651_s1 + $0x90] sm:$0xff] }
   0xa   :  { %83 = vmatpush.msra.mxu0 %v924_v11  ;;  %165 = vmatpush.msra.mxu3 %v924_v11  ;;  %v1027_v27 = vld [vmem:[%s1651_s1 + $0xa0] sm:$0xff]  ;;  %v1032_v28 = vld [vmem:[%s1651_s1 + $0xb0] sm:$0xff]  ;;  %v1038_v29 = vld [vmem:[%s1651_s1 + $0x78] sm:$0xff] }
   0xb   :  { %123 = vmatpush.msra.mxu2 %v932_v12  ;;  %102 = vmatpush.msra.mxu1 %v937_v13  ;;  %v1046_v30 = vld [vmem:[%s1651_s1 + $0x88] sm:$0xff]  ;;  %v1051_v31 = vld [vmem:[%s1651_s1 + $0x98] sm:$0xff]  ;;  %v1057_v32 = vld [vmem:[%s1651_s1 + $0x60] sm:$0xff] }
   0xc   :  { %84 = vmatpush.msra.mxu0 %v943_v14  ;;  %166 = vmatpush.msra.mxu3 %v943_v14  ;;  %v1065_v33 = vld [vmem:[%s1651_s1 + $0x70] sm:$0xff]  ;;  %v1070_v34 = vld [vmem:[%s1651_s1 + $0x80] sm:$0xff]  ;;  %v1076_v35 = vld [vmem:[%s1651_s1 + $0x48] sm:$0xff] }
   0xd   :  { %124 = vmatpush.msra.mxu2 %v951_v15  ;;  %103 = vmatpush.msra.mxu1 %v956_v16  ;;  %v1084_v36 = vld [vmem:[%s1651_s1 + $0x58] sm:$0xff]  ;;  %v1089_v37 = vld [vmem:[%s1651_s1 + $0x68] sm:$0xff]  ;;  %v1095_v38 = vld [vmem:[%s1651_s1 + $0x30] sm:$0xff] }
   0xe   :  { %85 = vmatpush.msra.mxu0 %v962_v17  ;;  %167 = vmatpush.msra.mxu3 %v962_v17  ;;  %v1103_v39 = vld [vmem:[%s1651_s1 + $0x40] sm:$0xff]  ;;  %v1108_v40 = vld [vmem:[%s1651_s1 + $0x50] sm:$0xff]  ;;  %v1114_v41 = vld [vmem:[%s1651_s1 + $0x18] sm:$0xff] }
   0xf   :  { %125 = vmatpush.msra.mxu2 %v970_v18  ;;  %104 = vmatpush.msra.mxu1 %v975_v19  ;;  %v1122_v42 = vld [vmem:[%s1651_s1 + $0x28] sm:$0xff]  ;;  %v1127_v43 = vld [vmem:[%s1651_s1 + $0x38] sm:$0xff]  ;;  %v1133_v44 = vld [vmem:[%s1651_s1] sm:$0xff] }
  0x10   :  { %86 = vmatpush.msra.mxu0 %v981_v20  ;;  %168 = vmatpush.msra.mxu3 %v981_v20  ;;  %1660 = vst [vmem:[#allocation3_spill] sm:$0xff] %v1133_v44  ;;  %v1141_v45 = vld [vmem:[%s1652_s3] sm:$0xff]  ;;  %v1146_v46 = vld [vmem:[%s1651_s1 + $0x10] sm:$0xff]  ;;  %v1163_v48 = vld [vmem:[%s1651_s1 + $0x8] sm:$0xff] }
  0x11   :  { %126 = vmatpush.msra.mxu2 %v989_v21  ;;  %105 = vmatpush.msra.mxu1 %v994_v22  ;;  %v1154_v47 = vld [vmem:[%s1651_s1 + $0x20] sm:$0xff]  ;;  %1661 = vst [vmem:[#allocation4_spill] sm:$0xff] %v1163_v48  ;;  %v77_v52 = vld [vmem:[%s1654_s0 + $0x8] sm:$0xff]  ;;  %v78_v63 = vld [vmem:[%s1654_s0 + $0x10] sm:$0xff] }
  0x12   :  { %87 = vmatpush.msra.mxu0 %v1000_v23  ;;  %169 = vmatpush.msra.mxu3 %v1000_v23  ;;  %v76_v49 = vld [vmem:[%s1654_s0] sm:$0xff] }
  0x13   :  { %127 = vmatpush.msra.mxu2 %v1008_v24  ;;  %106 = vmatpush.msra.mxu1 %v1013_v25  ;;  %v1290_v57 = vld [vmem:[%s1653_s2] ss:$0 sm:$0xff] }
  0x14   :  { %88 = vmatpush.msra.mxu0 %v1019_v26  ;;  %170 = vmatpush.msra.mxu3 %v1019_v26 }
  0x15   :  { %128 = vmatpush.msra.mxu2 %v1027_v27  ;;  %107 = vmatpush.msra.mxu1 %v1032_v28 }
  0x16   :  { %89 = vmatpush.msra.mxu0 %v1038_v29  ;;  %171 = vmatpush.msra.mxu3 %v1038_v29 }
  0x17   :  { %129 = vmatpush.msra.mxu2 %v1046_v30  ;;  %108 = vmatpush.msra.mxu1 %v1051_v31 }
  0x18   :  { %90 = vmatpush.msra.mxu0 %v1057_v32  ;;  %172 = vmatpush.msra.mxu3 %v1057_v32 }
  0x19   :  { %130 = vmatpush.msra.mxu2 %v1065_v33  ;;  %109 = vmatpush.msra.mxu1 %v1070_v34 }
  0x1a   :  { %91 = vmatpush.msra.mxu0 %v1076_v35  ;;  %173 = vmatpush.msra.mxu3 %v1076_v35 }
  0x1b   :  { %131 = vmatpush.msra.mxu2 %v1084_v36  ;;  %110 = vmatpush.msra.mxu1 %v1089_v37 }
  0x1c   :  { %92 = vmatpush.msra.mxu0 %v1095_v38  ;;  %174 = vmatpush.msra.mxu3 %v1095_v38 }
  0x1d   :  { %132 = vmatpush.msra.mxu2 %v1103_v39  ;;  %111 = vmatpush.msra.mxu1 %v1108_v40 }
  0x1e   :  { %93 = vmatpush.msra.mxu0 %v1114_v41  ;;  %175 = vmatpush.msra.mxu3 %v1114_v41 }
  0x1f   :  { %133 = vmatpush.msra.mxu2 %v1122_v42  ;;  %112 = vmatpush.msra.mxu1 %v1127_v43 }
  0x20   :  { %94 = vmatpush.msra.mxu0 %v1133_v44  ;;  %176 = vmatpush.msra.mxu3 %v1133_v44 }
  0x21   :  { %95 = vmatmul.f32.vlgmr.msra.gmra.mxu0 %v1141_v45  ;;  %134 = vmatpush.msra.mxu2 %v1146_v46 }
  0x22   :  { %135 = vmatmul.f32.vlgmr.msra.gmra.mxu2 %v1141_v45  ;;  %113 = vmatpush.msra.mxu1 %v1154_v47 }
  0x23   :  { %181 = vmatpush.msrb.mxu0 %v894_v6  ;;  %244 = vmatpush.msrb.mxu2 %v860_v0 }
  0x24   :  { %114 = vmatpush.msra.mxu1 %v1163_v48  ;;  %264 = vmatpush.msrb.mxu3 %v894_v6 }
  0x25   :  { %115 = vmatmul.f32.vlgmr.msra.gmra.mxu1 %v1141_v45  ;;  %182 = vmatpush.msrb.mxu0 %v907_v8 }
  0x26   :  { %201 = vmatpush.msrb.mxu1 %v871_v2  ;;  %245 = vmatpush.msrb.mxu2 %v865_v1 }
  0x27   :  { %183 = vmatpush.msrb.mxu0 %v918_v10  ;;  %265 = vmatpush.msrb.mxu3 %v907_v8 }
  0x28   :  { %202 = vmatpush.msrb.mxu1 %v883_v4  ;;  %246 = vmatpush.msrb.mxu2 %v877_v3 }
  0x29   :  { %184 = vmatpush.msrb.mxu0 %v937_v13  ;;  %266 = vmatpush.msrb.mxu3 %v918_v10 }
  0x2a   :  { %203 = vmatpush.msrb.mxu1 %v889_v5  ;;  %247 = vmatpush.msrb.mxu2 %v900_v7 }
  0x2b   :  { %185 = vmatpush.msrb.mxu0 %v956_v16  ;;  %267 = vmatpush.msrb.mxu3 %v937_v13 }
  0x2c   :  { %204 = vmatpush.msrb.mxu1 %v913_v9  ;;  %248 = vmatpush.msrb.mxu2 %v924_v11 }
  0x2d   :  { %186 = vmatpush.msrb.mxu0 %v975_v19  ;;  %268 = vmatpush.msrb.mxu3 %v956_v16 }
  0x2e   :  { %205 = vmatpush.msrb.mxu1 %v932_v12  ;;  %249 = vmatpush.msrb.mxu2 %v943_v14 }
  0x2f   :  { %187 = vmatpush.msrb.mxu0 %v994_v22  ;;  %269 = vmatpush.msrb.mxu3 %v975_v19 }
  0x30   :  { %206 = vmatpush.msrb.mxu1 %v951_v15  ;;  %250 = vmatpush.msrb.mxu2 %v962_v17 }
  0x31   :  { %188 = vmatpush.msrb.mxu0 %v1013_v25  ;;  %270 = vmatpush.msrb.mxu3 %v994_v22 }
  0x32   :  { %207 = vmatpush.msrb.mxu1 %v970_v18  ;;  %251 = vmatpush.msrb.mxu2 %v981_v20 }
  0x33   :  { %189 = vmatpush.msrb.mxu0 %v1032_v28  ;;  %271 = vmatpush.msrb.mxu3 %v1013_v25 }
  0x34   :  { %208 = vmatpush.msrb.mxu1 %v989_v21  ;;  %252 = vmatpush.msrb.mxu2 %v1000_v23 }
  0x35   :  { %190 = vmatpush.msrb.mxu0 %v1051_v31  ;;  %272 = vmatpush.msrb.mxu3 %v1032_v28 }
  0x36   :  { %209 = vmatpush.msrb.mxu1 %v1008_v24  ;;  %253 = vmatpush.msrb.mxu2 %v1019_v26 }
  0x37   :  { %191 = vmatpush.msrb.mxu0 %v1070_v34  ;;  %273 = vmatpush.msrb.mxu3 %v1051_v31 }
  0x38   :  { %210 = vmatpush.msrb.mxu1 %v1027_v27  ;;  %254 = vmatpush.msrb.mxu2 %v1038_v29 }
  0x39   :  { %192 = vmatpush.msrb.mxu0 %v1089_v37  ;;  %274 = vmatpush.msrb.mxu3 %v1070_v34 }
  0x3a   :  { %211 = vmatpush.msrb.mxu1 %v1046_v30  ;;  %255 = vmatpush.msrb.mxu2 %v1057_v32 }
  0x3b   :  { %193 = vmatpush.msrb.mxu0 %v1108_v40  ;;  %275 = vmatpush.msrb.mxu3 %v1089_v37 }
  0x3c   :  { %212 = vmatpush.msrb.mxu1 %v1065_v33  ;;  %256 = vmatpush.msrb.mxu2 %v1076_v35 }
  0x3d   :  { %194 = vmatpush.msrb.mxu0 %v1127_v43  ;;  %276 = vmatpush.msrb.mxu3 %v1108_v40 }
  0x3e   :  { %213 = vmatpush.msrb.mxu1 %v1084_v36  ;;  %257 = vmatpush.msrb.mxu2 %v1095_v38 }
  0x3f   :  { %195 = vmatpush.msrb.mxu0 %v1154_v47  ;;  %277 = vmatpush.msrb.mxu3 %v1127_v43 }
  0x40   :  { %214 = vmatpush.msrb.mxu1 %v1103_v39  ;;  %258 = vmatpush.msrb.mxu2 %v1114_v41 }
  0x41   :  { %196 = vmatpush.msrb.mxu0 %v1163_v48  ;;  %278 = vmatpush.msrb.mxu3 %v1154_v47 }
  0x42   :  { %215 = vmatpush.msrb.mxu1 %v1122_v42  ;;  %259 = vmatpush.msrb.mxu2 %v1133_v44 }
  0x43   :  { %284 = vmatpush.msra.mxu0 %v871_v2  ;;  %279 = vmatpush.msrb.mxu3 %v1163_v48 }
  0x44   :  { %216 = vmatpush.msrb.mxu1 %v1146_v46  ;;  %347 = vmatpush.msra.mxu2 %v894_v6 }
  0x45   :  { %285 = vmatpush.msra.mxu0 %v883_v4 }
  0x46   :  { %327 = vmatpush.msra.mxu1 %v860_v0  ;;  %348 = vmatpush.msra.mxu2 %v907_v8 }
  0x47   :  { %286 = vmatpush.msra.mxu0 %v889_v5 }
  0x48   :  { %328 = vmatpush.msra.mxu1 %v865_v1  ;;  %349 = vmatpush.msra.mxu2 %v918_v10 }
  0x49   :  { %287 = vmatpush.msra.mxu0 %v913_v9 }
  0x4a   :  { %329 = vmatpush.msra.mxu1 %v877_v3  ;;  %350 = vmatpush.msra.mxu2 %v937_v13 }
  0x4b   :  { %288 = vmatpush.msra.mxu0 %v932_v12 }
  0x4c   :  { %330 = vmatpush.msra.mxu1 %v900_v7  ;;  %351 = vmatpush.msra.mxu2 %v956_v16 }
  0x4d   :  { %289 = vmatpush.msra.mxu0 %v951_v15 }
  0x4e   :  { %331 = vmatpush.msra.mxu1 %v924_v11  ;;  %352 = vmatpush.msra.mxu2 %v975_v19 }
  0x4f   :  { %290 = vmatpush.msra.mxu0 %v970_v18 }
  0x50   :  { %332 = vmatpush.msra.mxu1 %v943_v14  ;;  %353 = vmatpush.msra.mxu2 %v994_v22 }
  0x51   :  { %291 = vmatpush.msra.mxu0 %v989_v21 }
  0x52   :  { %333 = vmatpush.msra.mxu1 %v962_v17  ;;  %354 = vmatpush.msra.mxu2 %v1013_v25 }
  0x53   :  { %292 = vmatpush.msra.mxu0 %v1008_v24 }
  0x54   :  { %334 = vmatpush.msra.mxu1 %v981_v20  ;;  %355 = vmatpush.msra.mxu2 %v1032_v28 }
  0x55   :  { %293 = vmatpush.msra.mxu0 %v1027_v27 }
  0x56   :  { %335 = vmatpush.msra.mxu1 %v1000_v23  ;;  %356 = vmatpush.msra.mxu2 %v1051_v31 }
  0x57   :  { %294 = vmatpush.msra.mxu0 %v1046_v30 }
  0x58   :  { %336 = vmatpush.msra.mxu1 %v1019_v26  ;;  %357 = vmatpush.msra.mxu2 %v1070_v34 }
  0x59   :  { %295 = vmatpush.msra.mxu0 %v1065_v33 }
  0x5a   :  { %337 = vmatpush.msra.mxu1 %v1038_v29  ;;  %358 = vmatpush.msra.mxu2 %v1089_v37 }
  0x5b   :  { %296 = vmatpush.msra.mxu0 %v1084_v36 }
  0x5c   :  { %338 = vmatpush.msra.mxu1 %v1057_v32  ;;  %359 = vmatpush.msra.mxu2 %v1108_v40 }
  0x5d   :  { %297 = vmatpush.msra.mxu0 %v1103_v39 }
  0x5e   :  { %339 = vmatpush.msra.mxu1 %v1076_v35  ;;  %360 = vmatpush.msra.mxu2 %v1127_v43 }
  0x5f   :  { %298 = vmatpush.msra.mxu0 %v1122_v42 }
  0x60   :  { %340 = vmatpush.msra.mxu1 %v1095_v38  ;;  %361 = vmatpush.msra.mxu2 %v1154_v47 }
  0x61   :  { %299 = vmatpush.msra.mxu0 %v1146_v46 }
  0x62   :  { %341 = vmatpush.msra.mxu1 %v1114_v41  ;;  %362 = vmatpush.msra.mxu2 %v1163_v48 }
  0x64   :  { %342 = vmatpush.msra.mxu1 %v1133_v44 }
  0x9e   :  { %v96_v50 = vpop.f32.mrf.mxu0 }
  0x9f   :  { %v139_v51 = vadd.f32 %v96_v50, %v76_v49 }
  0xa1   :  { %v140_v53 = vmul.f32 0.5, %v139_v51 }
  0xa2   :  { %v116_v54 = vpop.f32.mrf.mxu1 }
  0xa3   :  { %772 = vtanh.f32 %v140_v53  ;;  %v144_v55 = vadd.f32 %v116_v54, %v77_v52 }
  0xa5   :  { %v145_v56 = vmul.f32 0.5, %v144_v55  ;;  %v136_v58 = vpop.f32.mrf.mxu2 }
  0xa6   :  { %v149_v61 = vadd.f32 %v1290_v57, %v136_v58 }
  0xa7   :  { %774 = vtanh.f32 %v145_v56  ;;  %v743_v56 = vld [vmem:[%s1654_s0 + $0x18] sm:$0xff] }
  0xa9   :  { %v773_v59 = vpop.eup %772 }
  0xaa   :  { %v142_v60 = vmul.f32 0.5, %v773_v59 }
  0xac   :  { %v143_v62 = vadd.f32 0.5, %v142_v60  ;;  %v744_v60 = vld [vmem:[%s1654_s0 + $0x20] sm:$0xff] }
  0xad   :  { %v775_v50 = vpop.eup %774 }
  0xae   :  { %v150_v49 = vmul.f32 %v149_v61, %v143_v62  ;;  %v147_v52 = vmul.f32 0.5, %v775_v50 }
  0xb0   :  { %v151_v51 = vadd.f32 %v150_v49, %v78_v63  ;;  %v148_v53 = vadd.f32 0.5, %v147_v52 }
  0xb2   :  { %776 = vtanh.f32 %v151_v51 }
  0xb8   :  { %v777_v54 = vpop.eup %776 }
  0xb9   :  { %v153_v55 = vsub.f32 %v1141_v45, %v777_v54  ;;  %v1662_v45 = vld [vmem:[#allocation3_spill] sm:$0xff] }
  0xbb   :  { %v154_v48 = vmul.f32 %v153_v55, %v148_v53  ;;  %v745_v55 = vld [vmem:[%s1654_s0 + $0x28] sm:$0xff] }
  0xbd   :  { %v1297_v44 = vadd.f32 %v777_v54, %v154_v48  ;;  %v1663_v48 = vld [vmem:[#allocation4_spill] sm:$0xff] }
  0xbf   :  { %156 = vst [vmem:[%s1655_s4] sm:$0xff] %v1297_v44  ;;  %177 = vmatmul.f32.vlgmr.msra.gmra.mxu3 %v1297_v44  ;;  %197 = vmatmul.f32.vlgmr.msrb.gmra.mxu0 %v1297_v44 }
  0xc0   :  { %217 = vmatmul.f32.vlgmr.msrb.gmra.mxu1 %v1297_v44  ;;  %367 = vmatpush.msra.mxu3 %v871_v2 }
  0xc1   :  { %410 = vmatpush.msrb.mxu0 %v860_v0  ;;  %430 = vmatpush.msrb.mxu1 %v894_v6 }
  0xc2   :  { %368 = vmatpush.msra.mxu3 %v883_v4 }
  0xc3   :  { %411 = vmatpush.msrb.mxu0 %v865_v1  ;;  %431 = vmatpush.msrb.mxu1 %v907_v8 }
  0xc4   :  { %369 = vmatpush.msra.mxu3 %v889_v5 }
  0xc5   :  { %412 = vmatpush.msrb.mxu0 %v877_v3  ;;  %432 = vmatpush.msrb.mxu1 %v918_v10 }
  0xc6   :  { %370 = vmatpush.msra.mxu3 %v913_v9 }
  0xc7   :  { %413 = vmatpush.msrb.mxu0 %v900_v7  ;;  %433 = vmatpush.msrb.mxu1 %v937_v13 }
  0xc8   :  { %371 = vmatpush.msra.mxu3 %v932_v12 }
  0xc9   :  { %414 = vmatpush.msrb.mxu0 %v924_v11  ;;  %434 = vmatpush.msrb.mxu1 %v956_v16 }
  0xca   :  { %372 = vmatpush.msra.mxu3 %v951_v15 }
  0xcb   :  { %415 = vmatpush.msrb.mxu0 %v943_v14  ;;  %435 = vmatpush.msrb.mxu1 %v975_v19 }
  0xcc   :  { %373 = vmatpush.msra.mxu3 %v970_v18 }
  0xcd   :  { %416 = vmatpush.msrb.mxu0 %v962_v17  ;;  %436 = vmatpush.msrb.mxu1 %v994_v22 }
  0xce   :  { %374 = vmatpush.msra.mxu3 %v989_v21 }
  0xcf   :  { %417 = vmatpush.msrb.mxu0 %v981_v20  ;;  %437 = vmatpush.msrb.mxu1 %v1013_v25 }
  0xd0   :  { %375 = vmatpush.msra.mxu3 %v1008_v24 }
  0xd1   :  { %418 = vmatpush.msrb.mxu0 %v1000_v23  ;;  %438 = vmatpush.msrb.mxu1 %v1032_v28 }
  0xd2   :  { %376 = vmatpush.msra.mxu3 %v1027_v27 }
  0xd3   :  { %419 = vmatpush.msrb.mxu0 %v1019_v26  ;;  %439 = vmatpush.msrb.mxu1 %v1051_v31 }
  0xd4   :  { %377 = vmatpush.msra.mxu3 %v1046_v30 }
  0xd5   :  { %420 = vmatpush.msrb.mxu0 %v1038_v29  ;;  %440 = vmatpush.msrb.mxu1 %v1070_v34 }
  0xd6   :  { %378 = vmatpush.msra.mxu3 %v1065_v33 }
  0xd7   :  { %421 = vmatpush.msrb.mxu0 %v1057_v32  ;;  %441 = vmatpush.msrb.mxu1 %v1089_v37 }
  0xd8   :  { %379 = vmatpush.msra.mxu3 %v1084_v36 }
  0xd9   :  { %422 = vmatpush.msrb.mxu0 %v1076_v35  ;;  %442 = vmatpush.msrb.mxu1 %v1108_v40 }
  0xda   :  { %380 = vmatpush.msra.mxu3 %v1103_v39 }
  0xdb   :  { %423 = vmatpush.msrb.mxu0 %v1095_v38  ;;  %443 = vmatpush.msrb.mxu1 %v1127_v43 }
  0xdc   :  { %381 = vmatpush.msra.mxu3 %v1122_v42 }
  0xdd   :  { %424 = vmatpush.msrb.mxu0 %v1114_v41  ;;  %444 = vmatpush.msrb.mxu1 %v1154_v47 }
  0xde   :  { %382 = vmatpush.msra.mxu3 %v1146_v46 }
  0xdf   :  { %425 = vmatpush.msrb.mxu0 %v1662_v45  ;;  %445 = vmatpush.msrb.mxu1 %v1663_v48 }
 0x13c   :  { %v198_v61 = vpop.f32.mrf.mxu0 }
 0x13d   :  { %v226_v63 = vadd.f32 %v744_v60, %v198_v61  ;;  %v218_v51 = vpop.f32.mrf.mxu1 }
 0x13e   :  { %v231_v53 = vadd.f32 %v1290_v57, %v218_v51 }
 0x13f   :  { %v227_v49 = vmul.f32 0.5, %v226_v63 }
 0x142   :  { %v178_v58 = vpop.f32.mrf.mxu3 }
 0x143   :  { %v221_v59 = vadd.f32 %v743_v56, %v178_v58 }
 0x145   :  { %v222_v62 = vmul.f32 0.5, %v221_v59 }
 0x147   :  { %778 = vtanh.f32 %v222_v62 }
 0x148   :  { %780 = vtanh.f32 %v227_v49 }
 0x14d   :  { %v779_v50 = vpop.eup %778 }
 0x14e   :  { %v224_v52 = vmul.f32 0.5, %v779_v50  ;;  %v781_v48 = vpop.eup %780 }
 0x14f   :  { %v229_v45 = vmul.f32 0.5, %v781_v48  ;;  %v747_v48 = vld [vmem:[%s1654_s0 + $0x30] sm:$0xff] }
 0x150   :  { %v225_v54 = vadd.f32 0.5, %v224_v52  ;;  %v748_v52 = vld [vmem:[%s1654_s0 + $0x38] sm:$0xff] }
 0x151   :  { %v230_v62 = vadd.f32 0.5, %v229_v45  ;;  %v1665_v45 = vld [vmem:[#allocation4_spill] sm:$0xff] }
 0x152   :  { %v232_v56 = vmul.f32 %v231_v53, %v225_v54 }
 0x154   :  { %v233_v58 = vadd.f32 %v745_v55, %v232_v56 }
 0x156   :  { %782 = vtanh.f32 %v233_v58 }
 0x15c   :  { %v783_v59 = vpop.eup %782 }
 0x15d   :  { %v235_v60 = vsub.f32 %v1297_v44, %v783_v59  ;;  %v1664_v44 = vld [vmem:[#allocation3_spill] sm:$0xff] }
 0x15f   :  { %v236_v61 = vmul.f32 %v235_v60, %v230_v62 }
 0x161   :  { %v1365_v63 = vadd.f32 %v783_v59, %v236_v61  ;;  %v749_v61 = vld [vmem:[%s1654_s0 + $0x40] sm:$0xff] }
 0x163   :  { %746 = vst [vmem:[%s1655_s4 + $0x8] sm:$0xff] %v1365_v63  ;;  %260 = vmatmul.f32.vlgmr.msrb.gmra.mxu2 %v1365_v63  ;;  %280 = vmatmul.f32.vlgmr.msrb.gmra.mxu3 %v1365_v63 }
 0x164   :  { %300 = vmatmul.f32.vlgmr.msra.gmra.mxu0 %v1365_v63  ;;  %450 = vmatpush.msrb.mxu2 %v871_v2 }
 0x165   :  { %493 = vmatpush.msrb.mxu3 %v860_v0  ;;  %513 = vmatpush.msra.mxu0 %v894_v6 }
 0x166   :  { %451 = vmatpush.msrb.mxu2 %v883_v4 }
 0x167   :  { %494 = vmatpush.msrb.mxu3 %v865_v1  ;;  %514 = vmatpush.msra.mxu0 %v907_v8 }
 0x168   :  { %452 = vmatpush.msrb.mxu2 %v889_v5 }
 0x169   :  { %495 = vmatpush.msrb.mxu3 %v877_v3  ;;  %515 = vmatpush.msra.mxu0 %v918_v10 }
 0x16a   :  { %453 = vmatpush.msrb.mxu2 %v913_v9 }
 0x16b   :  { %496 = vmatpush.msrb.mxu3 %v900_v7  ;;  %516 = vmatpush.msra.mxu0 %v937_v13 }
 0x16c   :  { %454 = vmatpush.msrb.mxu2 %v932_v12 }
 0x16d   :  { %497 = vmatpush.msrb.mxu3 %v924_v11  ;;  %517 = vmatpush.msra.mxu0 %v956_v16 }
 0x16e   :  { %455 = vmatpush.msrb.mxu2 %v951_v15 }
 0x16f   :  { %498 = vmatpush.msrb.mxu3 %v943_v14  ;;  %518 = vmatpush.msra.mxu0 %v975_v19 }
 0x170   :  { %456 = vmatpush.msrb.mxu2 %v970_v18 }
 0x171   :  { %499 = vmatpush.msrb.mxu3 %v962_v17  ;;  %519 = vmatpush.msra.mxu0 %v994_v22 }
 0x172   :  { %457 = vmatpush.msrb.mxu2 %v989_v21 }
 0x173   :  { %500 = vmatpush.msrb.mxu3 %v981_v20  ;;  %520 = vmatpush.msra.mxu0 %v1013_v25 }
 0x174   :  { %458 = vmatpush.msrb.mxu2 %v1008_v24 }
 0x175   :  { %501 = vmatpush.msrb.mxu3 %v1000_v23  ;;  %521 = vmatpush.msra.mxu0 %v1032_v28 }
 0x176   :  { %459 = vmatpush.msrb.mxu2 %v1027_v27 }
 0x177   :  { %502 = vmatpush.msrb.mxu3 %v1019_v26  ;;  %522 = vmatpush.msra.mxu0 %v1051_v31 }
 0x178   :  { %460 = vmatpush.msrb.mxu2 %v1046_v30 }
 0x179   :  { %503 = vmatpush.msrb.mxu3 %v1038_v29  ;;  %523 = vmatpush.msra.mxu0 %v1070_v34 }
 0x17a   :  { %461 = vmatpush.msrb.mxu2 %v1065_v33 }
 0x17b   :  { %504 = vmatpush.msrb.mxu3 %v1057_v32  ;;  %524 = vmatpush.msra.mxu0 %v1089_v37 }
 0x17c   :  { %462 = vmatpush.msrb.mxu2 %v1084_v36 }
 0x17d   :  { %505 = vmatpush.msrb.mxu3 %v1076_v35  ;;  %525 = vmatpush.msra.mxu0 %v1108_v40 }
 0x17e   :  { %463 = vmatpush.msrb.mxu2 %v1103_v39 }
 0x17f   :  { %506 = vmatpush.msrb.mxu3 %v1095_v38  ;;  %526 = vmatpush.msra.mxu0 %v1127_v43 }
 0x180   :  { %464 = vmatpush.msrb.mxu2 %v1122_v42 }
 0x181   :  { %507 = vmatpush.msrb.mxu3 %v1114_v41  ;;  %527 = vmatpush.msra.mxu0 %v1154_v47 }
 0x182   :  { %465 = vmatpush.msrb.mxu2 %v1146_v46 }
 0x183   :  { %508 = vmatpush.msrb.mxu3 %v1664_v44  ;;  %528 = vmatpush.msra.mxu0 %v1665_v45 }
 0x1e1   :  { %v301_v58 = vpop.f32.mrf.mxu0 }
 0x1e2   :  { %v314_v62 = vadd.f32 %v1290_v57, %v301_v58 }
 0x1e6   :  { %v261_v49 = vpop.f32.mrf.mxu2  ;;  %v281_v53 = vpop.f32.mrf.mxu3 }
 0x1e7   :  { %v304_v50 = vadd.f32 %v747_v48, %v261_v49  ;;  %v309_v54 = vadd.f32 %v748_v52, %v281_v53 }
 0x1e9   :  { %v305_v51 = vmul.f32 0.5, %v304_v50  ;;  %v310_v55 = vmul.f32 0.5, %v309_v54 }
 0x1eb   :  { %784 = vtanh.f32 %v305_v51 }
 0x1ec   :  { %786 = vtanh.f32 %v310_v55 }
 0x1f1   :  { %v785_v56 = vpop.eup %784 }
 0x1f2   :  { %v307_v59 = vmul.f32 0.5, %v785_v56  ;;  %v787_v50 = vpop.eup %786 }
 0x1f3   :  { %v312_v45 = vmul.f32 0.5, %v787_v50 }
 0x1f4   :  { %v308_v60 = vadd.f32 0.5, %v307_v59  ;;  %v752_v59 = vld [vmem:[%s1654_s0 + $0x50] sm:$0xff] }
 0x1f5   :  { %v313_v51 = vadd.f32 0.5, %v312_v45  ;;  %v751_v45 = vld [vmem:[%s1654_s0 + $0x48] sm:$0xff] }
 0x1f6   :  { %v315_v48 = vmul.f32 %v314_v62, %v308_v60 }
 0x1f8   :  { %v316_v49 = vadd.f32 %v749_v61, %v315_v48 }
 0x1fa   :  { %788 = vtanh.f32 %v316_v49 }
 0x200   :  { %v789_v44 = vpop.eup %788 }
 0x201   :  { %v318_v52 = vsub.f32 %v1365_v63, %v789_v44  ;;  %v1666_v63 = vld [vmem:[#allocation3_spill] sm:$0xff] }
 0x203   :  { %v319_v53 = vmul.f32 %v318_v52, %v313_v51 }
 0x205   :  { %v1433_v54 = vadd.f32 %v789_v44, %v319_v53  ;;  %v1667_v44 = vld [vmem:[#allocation4_spill] sm:$0xff]  ;;  %v753_v53 = vld [vmem:[%s1654_s0 + $0x58] sm:$0xff] }
 0x207   :  { %750 = vst [vmem:[%s1655_s4 + $0x10] sm:$0xff] %v1433_v54  ;;  %343 = vmatmul.f32.vlgmr.msra.gmra.mxu1 %v1433_v54  ;;  %363 = vmatmul.f32.vlgmr.msra.gmra.mxu2 %v1433_v54 }
 0x208   :  { %383 = vmatmul.f32.vlgmr.msra.gmra.mxu3 %v1433_v54  ;;  %533 = vmatpush.msra.mxu1 %v871_v2 }
 0x209   :  { %576 = vmatpush.msra.mxu2 %v860_v0  ;;  %596 = vmatpush.msra.mxu3 %v894_v6 }
 0x20a   :  { %534 = vmatpush.msra.mxu1 %v883_v4 }
 0x20b   :  { %577 = vmatpush.msra.mxu2 %v865_v1  ;;  %597 = vmatpush.msra.mxu3 %v907_v8 }
 0x20c   :  { %535 = vmatpush.msra.mxu1 %v889_v5 }
 0x20d   :  { %578 = vmatpush.msra.mxu2 %v877_v3  ;;  %598 = vmatpush.msra.mxu3 %v918_v10 }
 0x20e   :  { %536 = vmatpush.msra.mxu1 %v913_v9 }
 0x20f   :  { %579 = vmatpush.msra.mxu2 %v900_v7  ;;  %599 = vmatpush.msra.mxu3 %v937_v13 }
 0x210   :  { %537 = vmatpush.msra.mxu1 %v932_v12 }
 0x211   :  { %580 = vmatpush.msra.mxu2 %v924_v11  ;;  %600 = vmatpush.msra.mxu3 %v956_v16 }
 0x212   :  { %538 = vmatpush.msra.mxu1 %v951_v15 }
 0x213   :  { %581 = vmatpush.msra.mxu2 %v943_v14  ;;  %601 = vmatpush.msra.mxu3 %v975_v19 }
 0x214   :  { %539 = vmatpush.msra.mxu1 %v970_v18 }
 0x215   :  { %582 = vmatpush.msra.mxu2 %v962_v17  ;;  %602 = vmatpush.msra.mxu3 %v994_v22 }
 0x216   :  { %540 = vmatpush.msra.mxu1 %v989_v21 }
 0x217   :  { %583 = vmatpush.msra.mxu2 %v981_v20  ;;  %603 = vmatpush.msra.mxu3 %v1013_v25 }
 0x218   :  { %541 = vmatpush.msra.mxu1 %v1008_v24 }
 0x219   :  { %584 = vmatpush.msra.mxu2 %v1000_v23  ;;  %604 = vmatpush.msra.mxu3 %v1032_v28 }
 0x21a   :  { %542 = vmatpush.msra.mxu1 %v1027_v27 }
 0x21b   :  { %585 = vmatpush.msra.mxu2 %v1019_v26  ;;  %605 = vmatpush.msra.mxu3 %v1051_v31 }
 0x21c   :  { %543 = vmatpush.msra.mxu1 %v1046_v30 }
 0x21d   :  { %586 = vmatpush.msra.mxu2 %v1038_v29  ;;  %606 = vmatpush.msra.mxu3 %v1070_v34 }
 0x21e   :  { %544 = vmatpush.msra.mxu1 %v1065_v33 }
 0x21f   :  { %587 = vmatpush.msra.mxu2 %v1057_v32  ;;  %607 = vmatpush.msra.mxu3 %v1089_v37 }
 0x220   :  { %545 = vmatpush.msra.mxu1 %v1084_v36 }
 0x221   :  { %588 = vmatpush.msra.mxu2 %v1076_v35  ;;  %608 = vmatpush.msra.mxu3 %v1108_v40 }
 0x222   :  { %546 = vmatpush.msra.mxu1 %v1103_v39 }
 0x223   :  { %589 = vmatpush.msra.mxu2 %v1095_v38  ;;  %609 = vmatpush.msra.mxu3 %v1127_v43 }
 0x224   :  { %547 = vmatpush.msra.mxu1 %v1122_v42 }
 0x225   :  { %590 = vmatpush.msra.mxu2 %v1114_v41  ;;  %610 = vmatpush.msra.mxu3 %v1154_v47 }
 0x226   :  { %548 = vmatpush.msra.mxu1 %v1146_v46 }
 0x227   :  { %591 = vmatpush.msra.mxu2 %v1666_v63  ;;  %611 = vmatpush.msra.mxu3 %v1667_v44 }
 0x284   :  { %v344_v55 = vpop.f32.mrf.mxu1 }
 0x285   :  { %v387_v56 = vadd.f32 %v751_v45, %v344_v55 }
 0x287   :  { %v388_v58 = vmul.f32 0.5, %v387_v56 }
 0x289   :  { %790 = vtanh.f32 %v388_v58 }
 0x28a   :  { %v364_v62 = vpop.f32.mrf.mxu2 }
 0x28b   :  { %v392_v60 = vadd.f32 %v752_v59, %v364_v62  ;;  %v384_v49 = vpop.f32.mrf.mxu3 }
 0x28c   :  { %v397_v52 = vadd.f32 %v1290_v57, %v384_v49 }
 0x28d   :  { %v393_v61 = vmul.f32 0.5, %v392_v60 }
 0x28f   :  { %v791_v48 = vpop.eup %790  ;;  %792 = vtanh.f32 %v393_v61 }
 0x290   :  { %v390_v50 = vmul.f32 0.5, %v791_v48  ;;  %v761_v48 = vld [vmem:[%s1654_s0 + $0x88] sm:$0xff] }
 0x292   :  { %v391_v51 = vadd.f32 0.5, %v390_v50 }
 0x294   :  { %v398_v45 = vmul.f32 %v397_v52, %v391_v51 }
 0x295   :  { %v793_v56 = vpop.eup %792 }
 0x296   :  { %v399_v55 = vadd.f32 %v753_v53, %v398_v45  ;;  %v395_v44 = vmul.f32 0.5, %v793_v56 }
 0x298   :  { %794 = vtanh.f32 %v399_v55  ;;  %v396_v63 = vadd.f32 0.5, %v395_v44 }
 0x29e   :  { %v795_v58 = vpop.eup %794 }
 0x29f   :  { %v401_v59 = vsub.f32 %v1433_v54, %v795_v58 }
 0x2a1   :  { %v402_v62 = vmul.f32 %v401_v59, %v396_v63  ;;  %v763_v59 = vld [vmem:[%s1654_s0 + $0x90] sm:$0xff] }
 0x2a3   :  { %v1501_v60 = vadd.f32 %v795_v58, %v402_v62 }
 0x2a5   :  { %754 = vst [vmem:[%s1655_s4 + $0x18] sm:$0xff] %v1501_v60  ;;  %426 = vmatmul.f32.vlgmr.msrb.gmra.mxu0 %v1501_v60  ;;  %446 = vmatmul.f32.vlgmr.msrb.gmra.mxu1 %v1501_v60 }
 0x2a6   :  { %466 = vmatmul.f32.vlgmr.msrb.gmra.mxu2 %v1501_v60  ;;  %616 = vmatpush.msrb.mxu0 %v871_v2  ;;  %v755_v2 = vld [vmem:[%s1654_s0 + $0x60] sm:$0xff] }
 0x2a7   :  { %659 = vmatpush.msrb.mxu1 %v860_v0  ;;  %679 = vmatpush.msrb.mxu2 %v894_v6  ;;  %v1668_v0 = vld [vmem:[#allocation3_spill] sm:$0xff]  ;;  %v756_v6 = vld [vmem:[%s1654_s0 + $0x68] sm:$0xff] }
 0x2a8   :  { %617 = vmatpush.msrb.mxu0 %v883_v4 }
 0x2a9   :  { %660 = vmatpush.msrb.mxu1 %v865_v1  ;;  %680 = vmatpush.msrb.mxu2 %v907_v8  ;;  %v1669_v1 = vld [vmem:[#allocation4_spill] sm:$0xff] }
 0x2aa   :  { %618 = vmatpush.msrb.mxu0 %v889_v5 }
 0x2ab   :  { %661 = vmatpush.msrb.mxu1 %v877_v3  ;;  %681 = vmatpush.msrb.mxu2 %v918_v10 }
 0x2ac   :  { %619 = vmatpush.msrb.mxu0 %v913_v9 }
 0x2ad   :  { %662 = vmatpush.msrb.mxu1 %v900_v7  ;;  %682 = vmatpush.msrb.mxu2 %v937_v13 }
 0x2ae   :  { %620 = vmatpush.msrb.mxu0 %v932_v12 }
 0x2af   :  { %663 = vmatpush.msrb.mxu1 %v924_v11  ;;  %683 = vmatpush.msrb.mxu2 %v956_v16 }
 0x2b0   :  { %621 = vmatpush.msrb.mxu0 %v951_v15  ;;  %v757_v15 = vld [vmem:[%s1654_s0 + $0x70] sm:$0xff] }
 0x2b1   :  { %664 = vmatpush.msrb.mxu1 %v943_v14  ;;  %684 = vmatpush.msrb.mxu2 %v975_v19 }
 0x2b2   :  { %622 = vmatpush.msrb.mxu0 %v970_v18 }
 0x2b3   :  { %665 = vmatpush.msrb.mxu1 %v962_v17  ;;  %685 = vmatpush.msrb.mxu2 %v994_v22 }
 0x2b4   :  { %623 = vmatpush.msrb.mxu0 %v989_v21 }
 0x2b5   :  { %666 = vmatpush.msrb.mxu1 %v981_v20  ;;  %686 = vmatpush.msrb.mxu2 %v1013_v25  ;;  %v820_v25 = vld [vmem:[%s1651_s1 + $0x178] sm:$0xff] }
 0x2b6   :  { %624 = vmatpush.msrb.mxu0 %v1008_v24 }
 0x2b7   :  { %667 = vmatpush.msrb.mxu1 %v1000_v23  ;;  %687 = vmatpush.msrb.mxu2 %v1032_v28  ;;  %v823_v28 = vld [vmem:[%s1651_s1 + $0x130] sm:$0xff] }
 0x2b8   :  { %625 = vmatpush.msrb.mxu0 %v1027_v27  ;;  %v822_v27 = vld [vmem:[%s1651_s1 + $0x148] sm:$0xff] }
 0x2b9   :  { %668 = vmatpush.msrb.mxu1 %v1019_v26  ;;  %688 = vmatpush.msrb.mxu2 %v1051_v31  ;;  %v821_v26 = vld [vmem:[%s1651_s1 + $0x160] sm:$0xff]  ;;  %v826_v31 = vld [vmem:[%s1651_s1 + $0xe8] sm:$0xff] }
 0x2ba   :  { %626 = vmatpush.msrb.mxu0 %v1046_v30  ;;  %v825_v30 = vld [vmem:[%s1651_s1 + $0x100] sm:$0xff] }
 0x2bb   :  { %669 = vmatpush.msrb.mxu1 %v1038_v29  ;;  %689 = vmatpush.msrb.mxu2 %v1070_v34  ;;  %v824_v29 = vld [vmem:[%s1651_s1 + $0x118] sm:$0xff]  ;;  %v829_v34 = vld [vmem:[%s1651_s1 + $0xa0] sm:$0xff] }
 0x2bc   :  { %627 = vmatpush.msrb.mxu0 %v1065_v33  ;;  %v828_v33 = vld [vmem:[%s1651_s1 + $0xb8] sm:$0xff] }
 0x2bd   :  { %670 = vmatpush.msrb.mxu1 %v1057_v32  ;;  %690 = vmatpush.msrb.mxu2 %v1089_v37  ;;  %v827_v32 = vld [vmem:[%s1651_s1 + $0xd0] sm:$0xff] }
 0x2be   :  { %628 = vmatpush.msrb.mxu0 %v1084_v36  ;;  %v831_v37 = vld [vmem:[%s1651_s1 + $0x70] sm:$0xff] }
 0x2bf   :  { %671 = vmatpush.msrb.mxu1 %v1076_v35  ;;  %691 = vmatpush.msrb.mxu2 %v1108_v40  ;;  %v830_v35 = vld [vmem:[%s1651_s1 + $0x88] sm:$0xff] }
 0x2c0   :  { %629 = vmatpush.msrb.mxu0 %v1103_v39 }
 0x2c1   :  { %672 = vmatpush.msrb.mxu1 %v1095_v38  ;;  %692 = vmatpush.msrb.mxu2 %v1127_v43  ;;  %v759_v38 = vld [vmem:[%s1654_s0 + $0x78] sm:$0xff]  ;;  %v760_v43 = vld [vmem:[%s1654_s0 + $0x80] sm:$0xff] }
 0x2c2   :  { %630 = vmatpush.msrb.mxu0 %v1122_v42 }
 0x2c3   :  { %673 = vmatpush.msrb.mxu1 %v1114_v41  ;;  %693 = vmatpush.msrb.mxu2 %v1154_v47 }
 0x2c4   :  { %631 = vmatpush.msrb.mxu0 %v1146_v46 }
 0x2c5   :  { %674 = vmatpush.msrb.mxu1 %v1668_v0  ;;  %694 = vmatpush.msrb.mxu2 %v1669_v1  ;;  %v764_v1 = vld [vmem:[%s1654_s0 + $0x98] sm:$0xff] }
 0x322   :  { %v427_v3 = vpop.f32.mrf.mxu0  ;;  %v447_v7 = vpop.f32.mrf.mxu1 }
 0x323   :  { %v470_v4 = vadd.f32 %v755_v2, %v427_v3  ;;  %v475_v8 = vadd.f32 %v756_v6, %v447_v7 }
 0x325   :  { %v471_v5 = vmul.f32 0.5, %v470_v4  ;;  %v476_v9 = vmul.f32 0.5, %v475_v8 }
 0x327   :  { %796 = vtanh.f32 %v471_v5 }
 0x328   :  { %798 = vtanh.f32 %v476_v9 }
 0x329   :  { %v467_v11 = vpop.f32.mrf.mxu2 }
 0x32a   :  { %v480_v14 = vadd.f32 %v1290_v57, %v467_v11 }
 0x32d   :  { %v797_v10 = vpop.eup %796 }
 0x32e   :  { %v473_v12 = vmul.f32 0.5, %v797_v10  ;;  %v799_v18 = vpop.eup %798  ;;  %v765_v10 = vld [vmem:[%s1654_s0 + $0xa0] sm:$0xff] }
 0x32f   :  { %v478_v19 = vmul.f32 0.5, %v799_v18 }
 0x330   :  { %v474_v13 = vadd.f32 0.5, %v473_v12 }
 0x331   :  { %v479_v21 = vadd.f32 0.5, %v478_v19 }
 0x332   :  { %v481_v16 = vmul.f32 %v480_v14, %v474_v13 }
 0x334   :  { %v482_v17 = vadd.f32 %v757_v15, %v481_v16 }
 0x336   :  { %800 = vtanh.f32 %v482_v17 }
 0x33c   :  { %v801_v20 = vpop.eup %800 }
 0x33d   :  { %v484_v22 = vsub.f32 %v1501_v60, %v801_v20 }
 0x33f   :  { %v485_v23 = vmul.f32 %v484_v22, %v479_v21 }
 0x341   :  { %v486_v24 = vadd.f32 %v801_v20, %v485_v23  ;;  %v767_v20 = vld [vmem:[%s1654_s0 + $0xa8] sm:$0xff] }
 0x343   :  { %758 = vst [vmem:[%s1655_s4 + $0x20] sm:$0xff] %v486_v24  ;;  %509 = vmatmul.f32.vlgmr.msrb.gmra.mxu3 %v486_v24  ;;  %529 = vmatmul.f32.vlgmr.msra.gmra.mxu0 %v486_v24 }
 0x344   :  { %549 = vmatmul.f32.vlgmr.msra.gmra.mxu1 %v486_v24  ;;  %699 = vmatpush.msrb.mxu3 %v820_v25 }
 0x346   :  { %700 = vmatpush.msrb.mxu3 %v821_v26 }
 0x348   :  { %701 = vmatpush.msrb.mxu3 %v822_v27 }
 0x34a   :  { %702 = vmatpush.msrb.mxu3 %v823_v28 }
 0x34c   :  { %703 = vmatpush.msrb.mxu3 %v824_v29 }
 0x34e   :  { %704 = vmatpush.msrb.mxu3 %v825_v30 }
 0x350   :  { %705 = vmatpush.msrb.mxu3 %v826_v31 }
 0x352   :  { %706 = vmatpush.msrb.mxu3 %v827_v32 }
 0x354   :  { %707 = vmatpush.msrb.mxu3 %v828_v33  ;;  %v769_v33 = vld [vmem:[%s1654_s0 + $0xb8] sm:$0xff] }
 0x356   :  { %708 = vmatpush.msrb.mxu3 %v829_v34 }
 0x358   :  { %709 = vmatpush.msrb.mxu3 %v830_v35 }
 0x35a   :  { %710 = vmatpush.msrb.mxu3 %v831_v37 }
 0x35c   :  { %711 = vmatpush.msrb.mxu3 %v1084_v36 }
 0x35e   :  { %712 = vmatpush.msrb.mxu3 %v1103_v39 }
 0x360   :  { %713 = vmatpush.msrb.mxu3 %v1122_v42 }
 0x362   :  { %714 = vmatpush.msrb.mxu3 %v1146_v46 }
 0x3c0   :  { %v530_v47 = vpop.f32.mrf.mxu0 }
 0x3c1   :  { %v558_v36 = vadd.f32 %v760_v43, %v530_v47  ;;  %v550_v44 = vpop.f32.mrf.mxu1 }
 0x3c2   :  { %v563_v46 = vadd.f32 %v1290_v57, %v550_v44 }
 0x3c3   :  { %v559_v63 = vmul.f32 0.5, %v558_v36 }
 0x3c6   :  { %v510_v40 = vpop.f32.mrf.mxu3 }
 0x3c7   :  { %v553_v41 = vadd.f32 %v759_v38, %v510_v40 }
 0x3c9   :  { %v554_v54 = vmul.f32 0.5, %v553_v41 }
 0x3cb   :  { %802 = vtanh.f32 %v554_v54 }
 0x3cc   :  { %804 = vtanh.f32 %v559_v63 }
 0x3d1   :  { %v803_v39 = vpop.eup %802 }
 0x3d2   :  { %v556_v42 = vmul.f32 0.5, %v803_v39  ;;  %v805_v51 = vpop.eup %804 }
 0x3d3   :  { %v561_v52 = vmul.f32 0.5, %v805_v51 }
 0x3d4   :  { %v557_v61 = vadd.f32 0.5, %v556_v42 }
 0x3d5   :  { %v562_v45 = vadd.f32 0.5, %v561_v52 }
 0x3d6   :  { %v564_v49 = vmul.f32 %v563_v46, %v557_v61 }
 0x3d8   :  { %v565_v50 = vadd.f32 %v761_v48, %v564_v49 }
 0x3da   :  { %806 = vtanh.f32 %v565_v50 }
 0x3e0   :  { %v807_v53 = vpop.eup %806 }
 0x3e1   :  { %v567_v55 = vsub.f32 %v486_v24, %v807_v53  ;;  %v768_v24 = vld [vmem:[%s1654_s0 + $0xb0] sm:$0xff] }
 0x3e3   :  { %v568_v56 = vmul.f32 %v567_v55, %v562_v45 }
 0x3e5   :  { %v569_v58 = vadd.f32 %v807_v53, %v568_v56 }
 0x3e7   :  { %762 = vst [vmem:[%s1655_s4 + $0x28] sm:$0xff] %v569_v58  ;;  %592 = vmatmul.f32.vlgmr.msra.gmra.mxu2 %v569_v58  ;;  %612 = vmatmul.f32.vlgmr.msra.gmra.mxu3 %v569_v58 }
 0x3e8   :  { %632 = vmatmul.f32.vlgmr.msrb.gmra.mxu0 %v569_v58 }
 0x465   :  { %v633_v6 = vpop.f32.mrf.mxu0 }
 0x466   :  { %v646_v8 = vadd.f32 %v1290_v57, %v633_v6 }
 0x46a   :  { %v593_v62 = vpop.f32.mrf.mxu2  ;;  %v613_v2 = vpop.f32.mrf.mxu3 }
 0x46b   :  { %v636_v60 = vadd.f32 %v763_v59, %v593_v62  ;;  %v641_v3 = vadd.f32 %v764_v1, %v613_v2 }
 0x46d   :  { %v637_v0 = vmul.f32 0.5, %v636_v60  ;;  %v642_v4 = vmul.f32 0.5, %v641_v3 }
 0x46f   :  { %808 = vtanh.f32 %v637_v0 }
 0x470   :  { %810 = vtanh.f32 %v642_v4 }
 0x475   :  { %v809_v5 = vpop.eup %808 }
 0x476   :  { %v639_v7 = vmul.f32 0.5, %v809_v5  ;;  %v811_v13 = vpop.eup %810 }
 0x477   :  { %v644_v14 = vmul.f32 0.5, %v811_v13 }
 0x478   :  { %v640_v9 = vadd.f32 0.5, %v639_v7 }
 0x479   :  { %v645_v16 = vadd.f32 0.5, %v644_v14 }
 0x47a   :  { %v647_v11 = vmul.f32 %v646_v8, %v640_v9 }
 0x47c   :  { %v648_v12 = vadd.f32 %v765_v10, %v647_v11 }
 0x47e   :  { %812 = vtanh.f32 %v648_v12 }
 0x484   :  { %v813_v15 = vpop.eup %812 }
 0x485   :  { %v650_v17 = vsub.f32 %v569_v58, %v813_v15 }
 0x487   :  { %v651_v18 = vmul.f32 %v650_v17, %v645_v16 }
 0x489   :  { %v652_v19 = vadd.f32 %v813_v15, %v651_v18 }
 0x48b   :  { %766 = vst [vmem:[%s1655_s4 + $0x30] sm:$0xff] %v652_v19  ;;  %675 = vmatmul.f32.vlgmr.msrb.gmra.mxu1 %v652_v19  ;;  %695 = vmatmul.f32.vlgmr.msrb.gmra.mxu2 %v652_v19 }
 0x48c   :  { %715 = vmatmul.f32.vlgmr.msrb.gmra.mxu3 %v652_v19 }
 0x508   :  { %v676_v21 = vpop.f32.mrf.mxu1 }
 0x509   :  { %v719_v22 = vadd.f32 %v767_v20, %v676_v21 }
 0x50b   :  { %v720_v23 = vmul.f32 0.5, %v719_v22 }
 0x50d   :  { %814 = vtanh.f32 %v720_v23 }
 0x50e   :  { %v696_v25 = vpop.f32.mrf.mxu2 }
 0x50f   :  { %v724_v26 = vadd.f32 %v768_v24, %v696_v25  ;;  %v716_v29 = vpop.f32.mrf.mxu3 }
 0x510   :  { %v729_v32 = vadd.f32 %v1290_v57, %v716_v29 }
 0x511   :  { %v725_v27 = vmul.f32 0.5, %v724_v26 }
 0x513   :  { %v815_v28 = vpop.eup %814  ;;  %816 = vtanh.f32 %v725_v27 }
 0x514   :  { %v722_v30 = vmul.f32 0.5, %v815_v28 }
 0x516   :  { %v723_v31 = vadd.f32 0.5, %v722_v30 }
 0x518   :  { %v730_v34 = vmul.f32 %v729_v32, %v723_v31 }
 0x519   :  { %v817_v37 = vpop.eup %816 }
 0x51a   :  { %v731_v35 = vadd.f32 %v769_v33, %v730_v34  ;;  %v727_v38 = vmul.f32 0.5, %v817_v37 }
 0x51c   :  { %818 = vtanh.f32 %v731_v35  ;;  %v728_v41 = vadd.f32 0.5, %v727_v38 }
 0x522   :  { %v819_v40 = vpop.eup %818 }
 0x523   :  { %v733_v43 = vsub.f32 %v652_v19, %v819_v40 }
 0x525   :  { %v734_v47 = vmul.f32 %v733_v43, %v728_v41 }
 0x527   :  { %v735_v54 = vadd.f32 %v819_v40, %v734_v47 }
 0x529   :  { %770 = vst [vmem:[%s1655_s4 + $0x38] sm:$0xff] %v735_v54 }

</bundles_post_ra>
